<compile_context>
chip_gen: v7x
topology: tpu7x:2x2x1
jax: 0.10.0
libtpu: 0.0.40
codegen_flags: <defaults>
</compile_context>

<pallas_src>
import math

import jax
import jax.numpy as jnp
from jax import lax
from jax.experimental import pallas as pl
from jax.experimental.pallas import tpu as pltpu


# ----------------------------- fused Pallas kernel ---------------------------

def _make_fused_kernel(num_layers):
    """Builds the fused kernel: MLP (Linear+PReLU x (L-1), Linear) + getre_scale
    + signed message propagation, all in one VMEM-resident block."""

    def kernel(*refs):
        scal_ref = refs[0]                       # SMEM [2]: (prelu slope, beta)
        feat_ref = refs[1]                       # [N, in_dim]
        lre_ref = refs[2]                        # [N, N]  learnable_re
        wb = refs[3:3 + 2 * num_layers]          # w0, b0, w1, b1, ...
        o_ref = refs[-1]                         # [N, D]

        alpha = scal_ref[0]
        beta = scal_ref[1]

        # ---- MLP: (Linear -> PReLU -> dropout[identity]) x (L-1), then Linear ----
        x = feat_ref[...]
        for i in range(num_layers - 1):
            y = jnp.dot(x, wb[2 * i][...], preferred_element_type=jnp.float32)
            y = y + wb[2 * i + 1][...]
            x = jnp.where(y > 0, y, alpha * y)                    # PReLU
        emb = jnp.dot(x, wb[-2][...],
                      preferred_element_type=jnp.float32) + wb[-1][...]   # [N, D]

        n = emb.shape[0]
        rows = lax.broadcasted_iota(jnp.int32, (n, n), 0)
        cols = lax.broadcasted_iota(jnp.int32, (n, n), 1)
        diag_mask = rows == cols

        # ---- getre_scale(emb): row-softmax gram, scaled by its diagonal ----
        m = jnp.max(emb, axis=1, keepdims=True)
        e = jnp.exp(emb - m)
        s = e * pl.reciprocal(jnp.sum(e, axis=1, keepdims=True), approx=False)
        # diag(s @ s.T)[i] = sum_k s[i,k]^2  -> O(N*D) row reduction, no NxN pass.
        diag = jnp.sum(s * s, axis=1, keepdims=True)              # [N, 1]
        # Fold 1/sqrt(d_i * d_j) into the gram operand: one matmul yields the
        # already-scaled relation matrix.
        s_hat = s * lax.rsqrt(jnp.maximum(diag, 1e-18))
        re = lax.dot_general(s_hat, s_hat, (((1,), (1,)), ((), ())),
                             preferred_element_type=jnp.float32)  # [N, N]
        re = jnp.where(diag_mask, 0.0, re)                        # zero diagonal

        # ---- blend with learnable_re, rescale by global mean/max, add I ----
        lr = beta * lre_ref[...] + (1.0 - beta) * re
        lr_mean = jnp.mean(lr)
        lr_max = jnp.max(lr)
        inv_pos = 1.0 / (lr_max - lr_mean)                        # scalar
        inv_mean = 1.0 / lr_mean                                  # scalar
        lr_c = lr - lr_mean
        # neg branch of the reference: -((lr_c + mean) / mean) == -(lr / mean)
        lr = jnp.where(lr_c > 0, lr_c * inv_pos, -(lr * inv_mean))
        lr = jnp.where(diag_mask, lr + 1.0, lr)                   # add_diag == +I

        # ---- signed propagation: one stacked [2N, N] @ [N, D] matmul ----
        stacked = jnp.concatenate([lr, -lr], axis=0)              # [2N, N]
        sig = jnp.where(stacked > 0, stacked, alpha * stacked)    # PReLU(+/-lr)
        prop = jnp.dot(sig, emb, preferred_element_type=jnp.float32)   # [2N, D]
        mm = jnp.max(prop, axis=1, keepdims=True)
        ee = jnp.exp(prop - mm)
        sm = ee * pl.reciprocal(jnp.sum(ee, axis=1, keepdims=True), approx=False)
        o_ref[...] = (sm[:n] - sm[n:] + emb) * 0.5

    return kernel


# ------------------------------ wrapper ---------------------------------------

_VMEM = pl.BlockSpec(memory_space=pltpu.MemorySpace.VMEM)
_SMEM = pl.BlockSpec(memory_space=pltpu.MemorySpace.SMEM)


def hete_propagate_layer_forward(feature, learnable_re, ws, bs, prelu_a, beta=0.0):
    num_layers = len(ws)
    n = feature.shape[0]
    out_dim = ws[-1].shape[1]
    scal = jnp.asarray([prelu_a, beta], jnp.float32)
    wb = []
    for w, b in zip(ws, bs):
        wb.extend((w, b))
    kernel = _make_fused_kernel(num_layers)
    return pl.pallas_call(
        kernel,
        out_shape=jax.ShapeDtypeStruct((n, out_dim), jnp.float32),
        in_specs=[_SMEM, _VMEM, _VMEM] + [_VMEM] * (2 * num_layers),
        out_specs=_VMEM,
        compiler_params=pltpu.CompilerParams(vmem_limit_bytes=32 * 1024 * 1024),
    )(scal, feature, learnable_re, *wb)


def init_params(key, feat_dim, output_dim, prop_steps, hidden_dim, num_layers):
    """Xavier-uniform weights (gain = sqrt(2), as nn.init.calculate_gain('relu')),
    zero biases, PReLU slope 0.25 (PyTorch default)."""
    gain = math.sqrt(2.0)
    in_dim = (prop_steps + 1) * feat_dim
    dims = [in_dim] + [hidden_dim] * (num_layers - 1) + [output_dim]
    ws, bs = [], []
    for i in range(num_layers):
        key, sub = jax.random.split(key)
        fan_in, fan_out = dims[i], dims[i + 1]
        bound = gain * math.sqrt(6.0 / (fan_in + fan_out))
        ws.append(jax.random.uniform(sub, (fan_in, fan_out), jnp.float32,
                                     minval=-bound, maxval=bound))
        bs.append(jnp.zeros((1, fan_out), jnp.float32))
    prelu_a = 0.25
    return ws, bs, prelu_a


# --------------------------- pure-JAX reference -------------------------------

def _reference_forward(feature, learnable_re, ws, bs, prelu_a, beta):
    def prelu(x, a):
        return jnp.where(x > 0, x, a * x)

    x = feature
    for i in range(len(ws) - 1):
        x = prelu(x @ ws[i] + bs[i], prelu_a)
    emb = x @ ws[-1] + bs[-1]
    s = jax.nn.softmax(emb, axis=1)
    re = s @ s.T
    d = jnp.diag(re)[:, None]
    scaling = d @ d.T
    re = re / jnp.maximum(jnp.sqrt(scaling), 1e-9)
    re = re - jnp.diag(jnp.diag(re))
    lr = beta * learnable_re + (1.0 - beta) * re
    mean = jnp.mean(lr)
    mx = jnp.max(lr)
    lr = lr - mean
    lr = jnp.where(lr > 0, lr / (mx - mean), -((lr + mean) / mean))
    lr = lr + jnp.eye(lr.shape[0], dtype=lr.dtype)
    pos = prelu(lr, prelu_a)
    neg = prelu(-lr, prelu_a)
    pp = jax.nn.softmax(pos @ emb, axis=1)
    pn = jax.nn.softmax(neg @ emb, axis=1)
    return (pp - pn + emb) / 2


# ----------------------------------- main -------------------------------------

if __name__ == "__main__":
    N = 128                       # number of graph nodes
    feat_dim = 16
    prop_steps = 3                # input width = (prop_steps + 1) * feat_dim = 64
    hidden_dim = 32
    output_dim = 16
    num_layers = 3
    beta = 0.0                    # module default

    key = jax.random.PRNGKey(0)
    kf, kr, kp = jax.random.split(key, 3)
    feature = jax.random.normal(kf, (N, (prop_steps + 1) * feat_dim), jnp.float32)
    learnable_re = jax.random.normal(kr, (N, N), jnp.float32)
    ws, bs, prelu_a = init_params(kp, feat_dim, output_dim, prop_steps,
                                  hidden_dim, num_layers)

    out = hete_propagate_layer_forward(feature, learnable_re, ws, bs, prelu_a, beta)
    out = jax.block_until_ready(out)

    ref = _reference_forward(feature, learnable_re, ws, bs, prelu_a, beta)
    ref = jax.block_until_ready(ref)
    assert out.shape == (N, output_dim)
    assert bool(jnp.allclose(out, ref, atol=1e-3, rtol=1e-3)), "mismatch vs JAX reference"

    print("KERNEL_OK")
</pallas_src>

<mosaic_0001>
module attributes {stable_mosaic.version = 11 : i64} {
  func.func @kernel(%arg0: memref<2xf32, #tpu.memory_space<smem>>, %arg1: memref<128x64xf32, #tpu.memory_space<vmem>>, %arg2: memref<128x128xf32, #tpu.memory_space<vmem>>, %arg3: memref<64x32xf32, #tpu.memory_space<vmem>>, %arg4: memref<1x32xf32, #tpu.memory_space<vmem>>, %arg5: memref<32x32xf32, #tpu.memory_space<vmem>>, %arg6: memref<1x32xf32, #tpu.memory_space<vmem>>, %arg7: memref<32x16xf32, #tpu.memory_space<vmem>>, %arg8: memref<1x16xf32, #tpu.memory_space<vmem>>, %arg9: memref<128x16xf32, #tpu.memory_space<vmem>>) attributes {dimension_semantics = [], scalar_prefetch = 0 : i64, scratch_operands = 0 : i64, tpu.core_type = #tpu.core_type<tc>} {
    %c0 = arith.constant 0 : index
    %0 = memref.load %arg0[%c0] : memref<2xf32, #tpu.memory_space<smem>>
    %c1 = arith.constant 1 : index
    %1 = memref.load %arg0[%c1] : memref<2xf32, #tpu.memory_space<smem>>
    %c0_0 = arith.constant 0 : index
    %c0_1 = arith.constant 0 : index
    %2 = vector.load %arg1[%c0_0, %c0_1] : memref<128x64xf32, #tpu.memory_space<vmem>>, vector<128x64xf32>
    %c0_2 = arith.constant 0 : index
    %c0_3 = arith.constant 0 : index
    %3 = vector.load %arg3[%c0_2, %c0_3] : memref<64x32xf32, #tpu.memory_space<vmem>>, vector<64x32xf32>
    %cst = arith.constant dense<0.000000e+00> : vector<128x32xf32>
    %4 = tpu.matmul %2, %3, %cst {dimension_numbers = #tpu.dot_dimension_numbers<[1], [0], [0], [1], [0, 0, 1, 1], [], []>} : vector<128x64xf32>, vector<64x32xf32>, vector<128x32xf32> -> vector<128x32xf32>
    %c0_4 = arith.constant 0 : index
    %c0_5 = arith.constant 0 : index
    %5 = vector.load %arg4[%c0_4, %c0_5] : memref<1x32xf32, #tpu.memory_space<vmem>>, vector<1x32xf32>
    %6 = vector.broadcast %5 : vector<1x32xf32> to vector<128x32xf32>
    %7 = arith.addf %4, %6 : vector<128x32xf32>
    %cst_6 = arith.constant 0.000000e+00 : f32
    %8 = vector.broadcast %cst_6 : f32 to vector<128x32xf32>
    %9 = arith.cmpf ogt, %7, %8 : vector<128x32xf32>
    %10 = vector.broadcast %0 : f32 to vector<128x32xf32>
    %11 = arith.mulf %10, %7 : vector<128x32xf32>
    %12 = arith.select %9, %7, %11 : vector<128x32xi1>, vector<128x32xf32>
    %c0_7 = arith.constant 0 : index
    %c0_8 = arith.constant 0 : index
    %13 = vector.load %arg5[%c0_7, %c0_8] : memref<32x32xf32, #tpu.memory_space<vmem>>, vector<32x32xf32>
    %cst_9 = arith.constant dense<0.000000e+00> : vector<128x32xf32>
    %14 = tpu.matmul %12, %13, %cst_9 {dimension_numbers = #tpu.dot_dimension_numbers<[1], [0], [0], [1], [0, 0, 1, 1], [], []>} : vector<128x32xf32>, vector<32x32xf32>, vector<128x32xf32> -> vector<128x32xf32>
    %c0_10 = arith.constant 0 : index
    %c0_11 = arith.constant 0 : index
    %15 = vector.load %arg6[%c0_10, %c0_11] : memref<1x32xf32, #tpu.memory_space<vmem>>, vector<1x32xf32>
    %16 = vector.broadcast %15 : vector<1x32xf32> to vector<128x32xf32>
    %17 = arith.addf %14, %16 : vector<128x32xf32>
    %cst_12 = arith.constant 0.000000e+00 : f32
    %18 = vector.broadcast %cst_12 : f32 to vector<128x32xf32>
    %19 = arith.cmpf ogt, %17, %18 : vector<128x32xf32>
    %20 = vector.broadcast %0 : f32 to vector<128x32xf32>
    %21 = arith.mulf %20, %17 : vector<128x32xf32>
    %22 = arith.select %19, %17, %21 : vector<128x32xi1>, vector<128x32xf32>
    %c0_13 = arith.constant 0 : index
    %c0_14 = arith.constant 0 : index
    %23 = vector.load %arg7[%c0_13, %c0_14] : memref<32x16xf32, #tpu.memory_space<vmem>>, vector<32x16xf32>
    %cst_15 = arith.constant dense<0.000000e+00> : vector<128x16xf32>
    %24 = tpu.matmul %22, %23, %cst_15 {dimension_numbers = #tpu.dot_dimension_numbers<[1], [0], [0], [1], [0, 0, 1, 1], [], []>} : vector<128x32xf32>, vector<32x16xf32>, vector<128x16xf32> -> vector<128x16xf32>
    %c0_16 = arith.constant 0 : index
    %c0_17 = arith.constant 0 : index
    %25 = vector.load %arg8[%c0_16, %c0_17] : memref<1x16xf32, #tpu.memory_space<vmem>>, vector<1x16xf32>
    %26 = vector.broadcast %25 : vector<1x16xf32> to vector<128x16xf32>
    %27 = arith.addf %24, %26 : vector<128x16xf32>
    %28 = tpu.iota {dimensions = array<i32: 0>} : vector<128x128xi32>
    %29 = tpu.iota {dimensions = array<i32: 1>} : vector<128x128xi32>
    %30 = arith.cmpi eq, %28, %29 : vector<128x128xi32>
    %cst_18 = arith.constant dense<0xFF800000> : vector<128xf32>
    %31 = vector.multi_reduction <maximumf>, %27, %cst_18 [1] : vector<128x16xf32> to vector<128xf32>
    %32 = vector.shape_cast %31 : vector<128xf32> to vector<128x1xf32>
    %33 = vector.broadcast %32 : vector<128x1xf32> to vector<128x16xf32>
    %34 = arith.subf %27, %33 : vector<128x16xf32>
    %35 = math.exp %34 : vector<128x16xf32>
    %cst_19 = arith.constant dense<0.000000e+00> : vector<128xf32>
    %36 = vector.multi_reduction <add>, %35, %cst_19 [1] : vector<128x16xf32> to vector<128xf32>
    %37 = vector.shape_cast %36 : vector<128xf32> to vector<128x1xf32>
    %38 = tpu.reciprocal %37 : vector<128x1xf32> -> vector<128x1xf32>
    %39 = vector.broadcast %38 : vector<128x1xf32> to vector<128x16xf32>
    %40 = arith.mulf %35, %39 : vector<128x16xf32>
    %41 = arith.mulf %40, %40 : vector<128x16xf32>
    %cst_20 = arith.constant dense<0.000000e+00> : vector<128xf32>
    %42 = vector.multi_reduction <add>, %41, %cst_20 [1] : vector<128x16xf32> to vector<128xf32>
    %43 = vector.shape_cast %42 : vector<128xf32> to vector<128x1xf32>
    %cst_21 = arith.constant 1.000000e-18 : f32
    %44 = vector.broadcast %cst_21 : f32 to vector<128x1xf32>
    %45 = arith.maximumf %43, %44 : vector<128x1xf32>
    %46 = math.rsqrt %45 : vector<128x1xf32>
    %47 = vector.broadcast %46 : vector<128x1xf32> to vector<128x16xf32>
    %48 = arith.mulf %40, %47 : vector<128x16xf32>
    %cst_22 = arith.constant dense<0.000000e+00> : vector<128x128xf32>
    %49 = tpu.matmul %48, %48, %cst_22 {dimension_numbers = #tpu.dot_dimension_numbers<[1], [1], [0], [0], [0, 0, 1, 0], [], []>} : vector<128x16xf32>, vector<128x16xf32>, vector<128x128xf32> -> vector<128x128xf32>
    %cst_23 = arith.constant 0.000000e+00 : f32
    %50 = vector.broadcast %cst_23 : f32 to vector<128x128xf32>
    %51 = arith.select %30, %50, %49 : vector<128x128xi1>, vector<128x128xf32>
    %c0_24 = arith.constant 0 : index
    %c0_25 = arith.constant 0 : index
    %52 = vector.load %arg2[%c0_24, %c0_25] : memref<128x128xf32, #tpu.memory_space<vmem>>, vector<128x128xf32>
    %53 = vector.broadcast %1 : f32 to vector<128x128xf32>
    %54 = arith.mulf %53, %52 : vector<128x128xf32>
    %cst_26 = arith.constant 1.000000e+00 : f32
    %55 = arith.subf %cst_26, %1 : f32
    %56 = vector.broadcast %55 : f32 to vector<128x128xf32>
    %57 = arith.mulf %56, %51 : vector<128x128xf32>
    %58 = arith.addf %54, %57 : vector<128x128xf32>
    %59 = vector.shape_cast %58 : vector<128x128xf32> to vector<1x128x128xf32>
    %cst_27 = arith.constant dense<0.000000e+00> : vector<1xf32>
    %60 = vector.multi_reduction <add>, %59, %cst_27 [1, 2] : vector<1x128x128xf32> to vector<1xf32>
    %61 = vector.shape_cast %60 : vector<1xf32> to vector<1x1x1xf32>
    %62 = vector.extract %61[0, 0, 0] : f32 from vector<1x1x1xf32>
    %cst_28 = arith.constant 1.638400e+04 : f32
    %63 = arith.divf %62, %cst_28 : f32
    %64 = vector.shape_cast %58 : vector<128x128xf32> to vector<1x128x128xf32>
    %cst_29 = arith.constant dense<0xFF800000> : vector<1xf32>
    %65 = vector.multi_reduction <maximumf>, %64, %cst_29 [1, 2] : vector<1x128x128xf32> to vector<1xf32>
    %66 = vector.shape_cast %65 : vector<1xf32> to vector<1x1x1xf32>
    %67 = vector.extract %66[0, 0, 0] : f32 from vector<1x1x1xf32>
    %68 = arith.subf %67, %63 : f32
    %cst_30 = arith.constant 1.000000e+00 : f32
    %69 = arith.divf %cst_30, %68 : f32
    %cst_31 = arith.constant 1.000000e+00 : f32
    %70 = arith.divf %cst_31, %63 : f32
    %71 = vector.broadcast %63 : f32 to vector<128x128xf32>
    %72 = arith.subf %58, %71 : vector<128x128xf32>
    %cst_32 = arith.constant 0.000000e+00 : f32
    %73 = vector.broadcast %cst_32 : f32 to vector<128x128xf32>
    %74 = arith.cmpf ogt, %72, %73 : vector<128x128xf32>
    %75 = vector.broadcast %69 : f32 to vector<128x128xf32>
    %76 = arith.mulf %72, %75 : vector<128x128xf32>
    %77 = vector.broadcast %70 : f32 to vector<128x128xf32>
    %78 = arith.mulf %58, %77 : vector<128x128xf32>
    %cst_33 = arith.constant 0.000000e+00 : f32
    %79 = vector.broadcast %cst_33 : f32 to vector<128x128xf32>
    %80 = arith.subf %79, %78 : vector<128x128xf32>
    %81 = arith.select %74, %76, %80 : vector<128x128xi1>, vector<128x128xf32>
    %cst_34 = arith.constant 1.000000e+00 : f32
    %82 = vector.broadcast %cst_34 : f32 to vector<128x128xf32>
    %83 = arith.addf %81, %82 : vector<128x128xf32>
    %84 = arith.select %30, %83, %81 : vector<128x128xi1>, vector<128x128xf32>
    %cst_35 = arith.constant 0.000000e+00 : f32
    %85 = vector.broadcast %cst_35 : f32 to vector<128x128xf32>
    %86 = arith.subf %85, %84 : vector<128x128xf32>
    %87 = tpu.concatenate %84, %86 in 0 : vector<128x128xf32>, vector<128x128xf32> -> vector<256x128xf32>
    %cst_36 = arith.constant 0.000000e+00 : f32
    %88 = vector.broadcast %cst_36 : f32 to vector<256x128xf32>
    %89 = arith.cmpf ogt, %87, %88 : vector<256x128xf32>
    %90 = vector.broadcast %0 : f32 to vector<256x128xf32>
    %91 = arith.mulf %90, %87 : vector<256x128xf32>
    %92 = arith.select %89, %87, %91 : vector<256x128xi1>, vector<256x128xf32>
    %cst_37 = arith.constant dense<0.000000e+00> : vector<256x16xf32>
    %93 = tpu.matmul %92, %27, %cst_37 {dimension_numbers = #tpu.dot_dimension_numbers<[1], [0], [0], [1], [0, 0, 1, 1], [], []>} : vector<256x128xf32>, vector<128x16xf32>, vector<256x16xf32> -> vector<256x16xf32>
    %cst_38 = arith.constant dense<0xFF800000> : vector<256xf32>
    %94 = vector.multi_reduction <maximumf>, %93, %cst_38 [1] : vector<256x16xf32> to vector<256xf32>
    %95 = vector.shape_cast %94 : vector<256xf32> to vector<256x1xf32>
    %96 = vector.broadcast %95 : vector<256x1xf32> to vector<256x16xf32>
    %97 = arith.subf %93, %96 : vector<256x16xf32>
    %98 = math.exp %97 : vector<256x16xf32>
    %cst_39 = arith.constant dense<0.000000e+00> : vector<256xf32>
    %99 = vector.multi_reduction <add>, %98, %cst_39 [1] : vector<256x16xf32> to vector<256xf32>
    %100 = vector.shape_cast %99 : vector<256xf32> to vector<256x1xf32>
    %101 = tpu.reciprocal %100 : vector<256x1xf32> -> vector<256x1xf32>
    %102 = vector.broadcast %101 : vector<256x1xf32> to vector<256x16xf32>
    %103 = arith.mulf %98, %102 : vector<256x16xf32>
    %104 = vector.extract_strided_slice %103 {offsets = [0, 0], sizes = [128, 16], strides = [1, 1]} : vector<256x16xf32> to vector<128x16xf32>
    %105 = vector.extract_strided_slice %103 {offsets = [128, 0], sizes = [128, 16], strides = [1, 1]} : vector<256x16xf32> to vector<128x16xf32>
    %106 = arith.subf %104, %105 : vector<128x16xf32>
    %107 = arith.addf %106, %27 : vector<128x16xf32>
    %cst_40 = arith.constant 5.000000e-01 : f32
    %108 = vector.broadcast %cst_40 : f32 to vector<128x16xf32>
    %109 = arith.mulf %107, %108 : vector<128x16xf32>
    %c0_41 = arith.constant 0 : index
    %c0_42 = arith.constant 0 : index
    %110 = vector.load %arg9[%c0_41, %c0_42] : memref<128x16xf32, #tpu.memory_space<vmem>>, vector<128x16xf32>
    tpu.vector_store %arg9[%c0_41, %c0_42], %109 {strides = array<i32>} : memref<128x16xf32, #tpu.memory_space<vmem>>, vector<128x16xf32>,
    return
  }
}

</mosaic_0001>

<bundles_post_ra>
// kernel: tpu_custom_call.1
= control target key start
LH: loop header
LB: loop body
LE: loop exit
PB: predicated region body
PF: predicated region fallthrough
CT: control target
= control target key end

     0   :  { %14 = vsyncpa [#allocation3], 0  ;;  %s4882_s0 = inlined_call_operand.vmem [shape: f32[2], index: 0, kind: input, shape index: {}]   ;;  %s4883_s1 = inlined_call_operand.vmem [shape: f32[128,64], index: 1, kind: input, shape index: {}]   ;;  %s4884_s2 = inlined_call_operand.vmem [shape: f32[128,128], index: 2, kind: input, shape index: {}]   ;;  %s4885_s3 = inlined_call_operand.vmem [shape: f32[64,32], index: 3, kind: input, shape index: {}]   ;;  %s4886_s4 = inlined_call_operand.vmem [shape: f32[1,32], index: 4, kind: input, shape index: {}]   ;;  %s4887_s5 = inlined_call_operand.vmem [shape: f32[32,32], index: 5, kind: input, shape index: {}]   ;;  %s4888_s6 = inlined_call_operand.vmem [shape: f32[1,32], index: 6, kind: input, shape index: {}]   ;;  %s4889_s7 = inlined_call_operand.vmem [shape: f32[32,16], index: 7, kind: input, shape index: {}]   ;;  %s4890_s8 = inlined_call_operand.vmem [shape: f32[1,16], index: 8, kind: input, shape index: {}]   ;;  %s4891_s9 = inlined_call_operand.vmem [shape: f32[128,16], index: 9, kind: output, shape index: {}]  }
   0x1   :  { %s21_s11 = sshll.u32 %s4882_s0, 4  ;;  %s22_s11 = int_to_ptr.vmem [resolvable:$true] %s21_s11 }
   0x2   :  { %s3158_s12 = scalar_lea.vmem %s22_s11, 16  ;;  %p3163_p1 = scmp.lt.s32.totalorder %s22_s11, %s22_s11 }
   0x3   :  { %p3159_p0 = scmp.ne.s32.totalorder %s22_s11, %s3158_s12  ;;  %p3164_p2 = scmp.lt.s32.totalorder %s3158_s12, %s3158_s12 }
   0x5   :  { %p3165_p3 = por %p3164_p2, %p3163_p1 }
   0x7   :  { %p3166_p4 = pnand %p3165_p3, %p3159_p0 }
   0x9   :  { %3169 = shalt.err (!%p3166_p4)
}
   0xa   :  { %s3172_s13 = smov [#allocation2]  }
   0xb   :  { %24 = dma.vmem_to_smem %s22_s11, 16, %s3172_s13, [#allocation3]  }
   0xc   :  { %3170 = dma.done.wait [#allocation3], 16  }
   0xd   :  { %3171 = vsyncadd [#allocation3], 4294967280 }
   0xe   :  { %44 = sfence }
   0xf   :  { %v63_v0 = vld [vmem:[%s4885_s3] sm:$0xff]  ;;  %v64_v1 = vld [vmem:[%s4885_s3 + $0x8] sm:$0xff]  ;;  %v65_v2 = vld [vmem:[%s4885_s3 + $0x10] sm:$0xff]  ;;  %vm78_vm0 = vcmask 523264   ;;  %s45_s26 = sld [smem:[#allocation2]]  ;;  %vm332_vm3 = vcmask 261120  }
  0x10   :  { %v2793_v3 = vpack.c.bf16 %v64_v1, %v63_v0  ;;  %v66_v4 = vld [vmem:[%s4885_s3 + $0x18] sm:$0xff]  ;;  %v67_v6 = vld [vmem:[%s4885_s3 + $0x20] sm:$0xff]  ;;  %v68_v7 = vld [vmem:[%s4885_s3 + $0x28] sm:$0xff] }
  0x11   :  { %v2797_v5 = vpack.c.bf16 %v66_v4, %v65_v2  ;;  %v47_v8 = vld [vmem:[%s4883_s1] sm:$0xff]  ;;  %v2801_v9 = vpack.c.bf16 %v68_v7, %v67_v6  ;;  %v69_v10 = vld [vmem:[%s4885_s3 + $0x30] sm:$0xff]  ;;  %v70_v11 = vld [vmem:[%s4885_s3 + $0x38] sm:$0xff] }
  0x12   :  { %2794 = vmatprep.subr.bf16.mxu0 %v2793_v3  ;;  %2569 = vmatprep.mubr.msk.f32.mxu0 %vm78_vm0, %v47_v8  ;;  %v2805_v12 = vpack.c.bf16 %v70_v11, %v69_v10  ;;  %v48_v13 = vld [vmem:[%s4883_s1 + $0x8] sm:$0xff]  ;;  %v49_v14 = vld [vmem:[%s4883_s1 + $0x10] sm:$0xff]  ;;  %v50_v15 = vld [vmem:[%s4883_s1 + $0x18] sm:$0xff] }
  0x13   :  { %2796 = vmatpush3.bf16.msra.mxu0 %v2793_v3  ;;  %v51_v16 = vld [vmem:[%s4883_s1 + $0x20] sm:$0xff]  ;;  %v52_v17 = vld [vmem:[%s4883_s1 + $0x28] sm:$0xff]  ;;  %v53_v18 = vld [vmem:[%s4883_s1 + $0x30] sm:$0xff] }
  0x14   :  { %2798 = vmatprep.subr.bf16.mxu0 %v2797_v5  ;;  %v54_v19 = vld [vmem:[%s4883_s1 + $0x38] sm:$0xff]  ;;  %v55_v20 = vld [vmem:[%s4883_s1 + $0x40] sm:$0xff]  ;;  %v56_v21 = vld [vmem:[%s4883_s1 + $0x48] sm:$0xff] }
  0x15   :  { %v57_v22 = vld [vmem:[%s4883_s1 + $0x50] sm:$0xff]  ;;  %v58_v23 = vld [vmem:[%s4883_s1 + $0x58] sm:$0xff]  ;;  %v59_v24 = vld [vmem:[%s4883_s1 + $0x60] sm:$0xff]  ;;  %v3337_v39 = vstv %s45_s26 }
  0x16   :  { %v60_v25 = vld [vmem:[%s4883_s1 + $0x68] sm:$0xff]  ;;  %v61_v26 = vld [vmem:[%s4883_s1 + $0x70] sm:$0xff]  ;;  %v62_v27 = vld [vmem:[%s4883_s1 + $0x78] sm:$0xff] }
  0x17   :  { %2800 = vmatpush3.bf16.msra.mxu0 %v2797_v5  ;;  %v321_v28 = vld [vmem:[%s4887_s5] sm:$0xff]  ;;  %v322_v29 = vld [vmem:[%s4887_s5 + $0x8] sm:$0xff]  ;;  %v323_v31 = vld [vmem:[%s4887_s5 + $0x10] sm:$0xff] }
  0x18   :  { %2802 = vmatprep.subr.bf16.mxu0 %v2801_v9  ;;  %v2809_v30 = vpack.c.bf16 %v322_v29, %v321_v28  ;;  %v324_v32 = vld [vmem:[%s4887_s5 + $0x18] sm:$0xff]  ;;  %v574_v34 = vld [vmem:[%s4889_s7] sm:$0xff]  ;;  %v575_v35 = vld [vmem:[%s4889_s7 + $0x8] sm:$0xff] }
  0x19   :  { %v2813_v33 = vpack.c.bf16 %v324_v32, %v323_v31  ;;  %v2817_v36 = vpack.c.bf16 %v575_v35, %v574_v34  ;;  %v3335_v37 = vld [vmem:[%s4886_s4] ss:$0 sm:$0xff]  ;;  %v576_v44 = vld [vmem:[%s4889_s7 + $0x10] sm:$0xff]  ;;  %v577_v45 = vld [vmem:[%s4889_s7 + $0x18] sm:$0xff] }
  0x1a   :  { %2810 = vmatprep.subr.bf16.mxu1 %v2809_v30  ;;  %v2821_v52 = vpack.c.bf16 %v577_v45, %v576_v44 }
  0x1b   :  { %2804 = vmatpush3.bf16.msra.mxu0 %v2801_v9  ;;  %2812 = vmatpush3.bf16.msra.mxu1 %v2809_v30 }
  0x1c   :  { %2806 = vmatprep.subr.bf16.mxu0 %v2805_v12  ;;  %2814 = vmatprep.subr.bf16.mxu1 %v2813_v33 }
  0x1f   :  { %2808 = vmatpush3.bf16.msra.mxu0 %v2805_v12  ;;  %2816 = vmatpush3.bf16.msra.mxu1 %v2813_v33 }
  0x20   :  { %2818 = vmatprep.subr.bf16.mxu1 %v2817_v36 }
  0x22   :  { %2570 = vmatmul.mubr.msk.f32.vlgmr.msra.gmra.mrb[0].mxu0 %vm78_vm0, %v48_v13 }
  0x23   :  { %2572 = vmatprep.mubr.msk.f32.mxu0 %vm78_vm0, %v49_v14 }
  0x26   :  { %2573 = vmatmul.mubr.msk.f32.gmra.mrb[2].mxu0 %vm78_vm0, %v50_v15 }
  0x27   :  { %2575 = vmatprep.mubr.msk.f32.mxu0 %vm78_vm0, %v51_v16 }
  0x2a   :  { %2576 = vmatmul.mubr.msk.f32.gmra.mrb[4].mxu0 %vm78_vm0, %v52_v17 }
  0x2b   :  { %2578 = vmatprep.mubr.msk.f32.mxu0 %vm78_vm0, %v53_v18 }
  0x2e   :  { %2579 = vmatmul.mubr.msk.f32.gmra.mrb[6].mxu0 %vm78_vm0, %v54_v19 }
  0x2f   :  { %2581 = vmatprep.mubr.msk.f32.mxu0 %vm78_vm0, %v55_v20 }
  0x32   :  { %2582 = vmatmul.mubr.msk.f32.gmra.mrb[8].mxu0 %vm78_vm0, %v56_v21 }
  0x33   :  { %2584 = vmatprep.mubr.msk.f32.mxu0 %vm78_vm0, %v57_v22 }
  0x36   :  { %2585 = vmatmul.mubr.msk.f32.gmra.mrb[10].mxu0 %vm78_vm0, %v58_v23 }
  0x37   :  { %2587 = vmatprep.mubr.msk.f32.mxu0 %vm78_vm0, %v59_v24 }
  0x3a   :  { %2588 = vmatmul.mubr.msk.f32.gmra.mrb[12].mxu0 %vm78_vm0, %v60_v25 }
  0x3b   :  { %2590 = vmatprep.mubr.msk.f32.mxu0 %vm78_vm0, %v61_v26 }
  0x3e   :  { %2591 = vmatmul.mubr.msk.f32.gmra.mrb[14].mxu0 %vm78_vm0, %v62_v27 }
  0xf5   :  { %v2571_v38 = vpop.f32.mrb[0].mxu0 }
  0xf6   :  { %v199_v40 = vadd.f32 %v2571_v38, %v3335_v37  ;;  %v193_v41 = vpop.f32.mrb[1].mxu0 }
  0xf7   :  { %v194_v42 = vadd.f32 %v3335_v37, %v193_v41 }
  0xf8   :  { %v290_v43 = vmul.f32 %v3337_v39, %v199_v40  ;;  %vm273_vm1 = vcmp.gt.f32.partialorder %v199_v40, 0.0 }
  0xf9   :  { %v2574_v46 = vpop.f32.mrb[2].mxu0  ;;  %vm272_vm2 = vcmp.gt.f32.partialorder %v194_v42, 0.0  ;;  %v289_v47 = vmul.f32 %v3337_v39, %v194_v42 }
  0xfa   :  { %v209_v48 = vadd.f32 %v2574_v46, %v3335_v37  ;;  %v203_v49 = vpop.f32.mrb[3].mxu0  ;;  %v306_v54 = vsel %vm273_vm1, %v199_v40, %v290_v43 }
  0xfb   :  { %v204_v50 = vadd.f32 %v3335_v37, %v203_v49  ;;  %v305_v51 = vsel %vm272_vm2, %v194_v42, %v289_v47 }
  0xfc   :  { %vm275_vm4 = vcmp.gt.f32.partialorder %v209_v48, 0.0  ;;  %v292_v53 = vmul.f32 %v3337_v39, %v209_v48  ;;  %2601 = vmatprep.mubr.msk.f32.mxu1 %vm332_vm3, %v305_v51 }
  0xfd   :  { %vm274_vm5 = vcmp.gt.f32.partialorder %v204_v50, 0.0  ;;  %v291_v55 = vmul.f32 %v3337_v39, %v204_v50  ;;  %v2577_v56 = vpop.f32.mrb[4].mxu0  ;;  %2602 = vmatmul.mubr.msk.f32.vlgmr.msra.gmra.mrb[0].mxu1 %vm332_vm3, %v306_v54 }
  0xfe   :  { %v219_v57 = vadd.f32 %v2577_v56, %v3335_v37  ;;  %v213_v58 = vpop.f32.mrb[5].mxu0  ;;  %v308_v59 = vsel %vm275_vm4, %v209_v48, %v292_v53  ;;  %2820 = vmatpush3.bf16.msra.mxu1 %v2817_v36 }
  0xff   :  { %v214_v60 = vadd.f32 %v3335_v37, %v213_v58  ;;  %v307_v61 = vsel %vm274_vm5, %v204_v50, %v291_v55  ;;  %2822 = vmatprep.subr.bf16.mxu1 %v2821_v52 }
 0x100   :  { %vm277_vm6 = vcmp.gt.f32.partialorder %v219_v57, 0.0  ;;  %v294_v62 = vmul.f32 %v3337_v39, %v219_v57  ;;  %2604 = vmatprep.mubr.msk.f32.mxu1 %vm332_vm3, %v307_v61 }
 0x101   :  { %vm276_vm7 = vcmp.gt.f32.partialorder %v214_v60, 0.0  ;;  %v293_v63 = vmul.f32 %v3337_v39, %v214_v60  ;;  %v2580_v0 = vpop.f32.mrb[6].mxu0  ;;  %2605 = vmatmul.mubr.msk.f32.gmra.mrb[2].mxu1 %vm332_vm3, %v308_v59 }
 0x102   :  { %v229_v1 = vadd.f32 %v2580_v0, %v3335_v37  ;;  %v223_v2 = vpop.f32.mrb[7].mxu0  ;;  %v310_v3 = vsel %vm277_vm6, %v219_v57, %v294_v62  ;;  %2824 = vmatpush3.bf16.msra.mxu1 %v2821_v52 }
 0x103   :  { %v224_v4 = vadd.f32 %v3335_v37, %v223_v2  ;;  %v309_v5 = vsel %vm276_vm7, %v214_v60, %v293_v63 }
 0x104   :  { %vm279_vm8 = vcmp.gt.f32.partialorder %v229_v1, 0.0  ;;  %v296_v6 = vmul.f32 %v3337_v39, %v229_v1  ;;  %2607 = vmatprep.mubr.msk.f32.mxu1 %vm332_vm3, %v309_v5 }
 0x105   :  { %vm278_vm9 = vcmp.gt.f32.partialorder %v224_v4, 0.0  ;;  %v295_v7 = vmul.f32 %v3337_v39, %v224_v4  ;;  %v2583_v8 = vpop.f32.mrb[8].mxu0  ;;  %2608 = vmatmul.mubr.msk.f32.gmra.mrb[4].mxu1 %vm332_vm3, %v310_v3 }
 0x106   :  { %v239_v9 = vadd.f32 %v2583_v8, %v3335_v37  ;;  %v233_v10 = vpop.f32.mrb[9].mxu0  ;;  %v312_v11 = vsel %vm279_vm8, %v229_v1, %v296_v6 }
 0x107   :  { %v234_v12 = vadd.f32 %v3335_v37, %v233_v10  ;;  %v311_v13 = vsel %vm278_vm9, %v224_v4, %v295_v7 }
 0x108   :  { %vm281_vm10 = vcmp.gt.f32.partialorder %v239_v9, 0.0  ;;  %v298_v14 = vmul.f32 %v3337_v39, %v239_v9  ;;  %2610 = vmatprep.mubr.msk.f32.mxu1 %vm332_vm3, %v311_v13 }
 0x109   :  { %vm280_vm11 = vcmp.gt.f32.partialorder %v234_v12, 0.0  ;;  %v297_v15 = vmul.f32 %v3337_v39, %v234_v12  ;;  %v2586_v16 = vpop.f32.mrb[10].mxu0  ;;  %2611 = vmatmul.mubr.msk.f32.gmra.mrb[6].mxu1 %vm332_vm3, %v312_v11 }
 0x10a   :  { %v249_v17 = vadd.f32 %v2586_v16, %v3335_v37  ;;  %v243_v18 = vpop.f32.mrb[11].mxu0  ;;  %v314_v19 = vsel %vm281_vm10, %v239_v9, %v298_v14 }
 0x10b   :  { %v244_v20 = vadd.f32 %v3335_v37, %v243_v18  ;;  %v313_v21 = vsel %vm280_vm11, %v234_v12, %v297_v15 }
 0x10c   :  { %vm283_vm12 = vcmp.gt.f32.partialorder %v249_v17, 0.0  ;;  %v300_v22 = vmul.f32 %v3337_v39, %v249_v17  ;;  %2613 = vmatprep.mubr.msk.f32.mxu1 %vm332_vm3, %v313_v21 }
 0x10d   :  { %vm282_vm13 = vcmp.gt.f32.partialorder %v244_v20, 0.0  ;;  %v299_v23 = vmul.f32 %v3337_v39, %v244_v20  ;;  %v2589_v24 = vpop.f32.mrb[12].mxu0  ;;  %2614 = vmatmul.mubr.msk.f32.gmra.mrb[8].mxu1 %vm332_vm3, %v314_v19 }
 0x10e   :  { %v259_v25 = vadd.f32 %v2589_v24, %v3335_v37  ;;  %v253_v26 = vpop.f32.mrb[13].mxu0  ;;  %v316_v27 = vsel %vm283_vm12, %v249_v17, %v300_v22 }
 0x10f   :  { %v254_v28 = vadd.f32 %v3335_v37, %v253_v26  ;;  %v315_v29 = vsel %vm282_vm13, %v244_v20, %v299_v23 }
 0x110   :  { %vm285_vm14 = vcmp.gt.f32.partialorder %v259_v25, 0.0  ;;  %v302_v30 = vmul.f32 %v3337_v39, %v259_v25  ;;  %2616 = vmatprep.mubr.msk.f32.mxu1 %vm332_vm3, %v315_v29 }
 0x111   :  { %vm284_vm15 = vcmp.gt.f32.partialorder %v254_v28, 0.0  ;;  %v301_v31 = vmul.f32 %v3337_v39, %v254_v28  ;;  %v2592_v32 = vpop.f32.mrb[14].mxu0  ;;  %2617 = vmatmul.mubr.msk.f32.gmra.mrb[10].mxu1 %vm332_vm3, %v316_v27 }
 0x112   :  { %v269_v33 = vadd.f32 %v2592_v32, %v3335_v37  ;;  %v263_v34 = vpop.f32.mrb[15].mxu0  ;;  %v318_v35 = vsel %vm285_vm14, %v259_v25, %v302_v30 }
 0x113   :  { %v264_v36 = vadd.f32 %v3335_v37, %v263_v34  ;;  %v317_v38 = vsel %vm284_vm15, %v254_v28, %v301_v31  ;;  %v3396_v37 = vld [vmem:[%s4888_s6] ss:$0 sm:$0xff] }
 0x114   :  { %vm287_vm0 = vcmp.gt.f32.partialorder %v269_v33, 0.0  ;;  %v304_v40 = vmul.f32 %v3337_v39, %v269_v33  ;;  %2619 = vmatprep.mubr.msk.f32.mxu1 %vm332_vm3, %v317_v38 }
 0x115   :  { %vm286_vm1 = vcmp.gt.f32.partialorder %v264_v36, 0.0  ;;  %v303_v41 = vmul.f32 %v3337_v39, %v264_v36  ;;  %2620 = vmatmul.mubr.msk.f32.gmra.mrb[12].mxu1 %vm332_vm3, %v318_v35 }
 0x116   :  { %v320_v42 = vsel %vm287_vm0, %v269_v33, %v304_v40 }
 0x117   :  { %v319_v43 = vsel %vm286_vm1, %v264_v36, %v303_v41 }
 0x118   :  { %2622 = vmatprep.mubr.msk.f32.mxu1 %vm332_vm3, %v319_v43 }
 0x119   :  { %2623 = vmatmul.mubr.msk.f32.gmra.mrb[14].mxu1 %vm332_vm3, %v320_v42 }
 0x1d0   :  { %v2603_v44 = vpop.f32.mrb[0].mxu1 }
 0x1d1   :  { %v453_v45 = vadd.f32 %v2603_v44, %v3396_v37  ;;  %v447_v46 = vpop.f32.mrb[1].mxu1 }
 0x1d2   :  { %v448_v47 = vadd.f32 %v3396_v37, %v447_v46 }
 0x1d3   :  { %v543_v48 = vmul.f32 %v453_v45, %v3337_v39  ;;  %vm527_vm2 = vcmp.gt.f32.partialorder %v453_v45, 0.0 }
 0x1d4   :  { %vm526_vm4 = vcmp.gt.f32.partialorder %v448_v47, 0.0  ;;  %v542_v49 = vmul.f32 %v448_v47, %v3337_v39  ;;  %v2606_v50 = vpop.f32.mrb[2].mxu1 }
 0x1d5   :  { %v463_v51 = vadd.f32 %v2606_v50, %v3396_v37  ;;  %v457_v52 = vpop.f32.mrb[3].mxu1  ;;  %v559_v55 = vsel %vm527_vm2, %v453_v45, %v543_v48 }
 0x1d6   :  { %v458_v53 = vadd.f32 %v3396_v37, %v457_v52  ;;  %v558_v54 = vsel %vm526_vm4, %v448_v47, %v542_v49  ;;  %vm4892_vm4 = vcmask 130048  }
 0x1d7   :  { %v545_v56 = vmul.f32 %v463_v51, %v3337_v39  ;;  %2633 = vmatprep.mubr.msk.f32.mxu1 %vm332_vm3, %v558_v54  ;;  %vm529_vm5 = vcmp.gt.f32.partialorder %v463_v51, 0.0 }
 0x1d8   :  { %vm528_vm6 = vcmp.gt.f32.partialorder %v458_v53, 0.0  ;;  %v544_v57 = vmul.f32 %v458_v53, %v3337_v39  ;;  %v2609_v58 = vpop.f32.mrb[4].mxu1  ;;  %2634 = vmatmul.mubr.msk.f32.vlgmr.msra.gmra.mrb[16].mxu1 %vm332_vm3, %v559_v55 }
 0x1d9   :  { %v473_v59 = vadd.f32 %v2609_v58, %v3396_v37  ;;  %v467_v60 = vpop.f32.mrb[5].mxu1  ;;  %v561_v0 = vsel %vm529_vm5, %v463_v51, %v545_v56 }
 0x1da   :  { %v468_v61 = vadd.f32 %v3396_v37, %v467_v60  ;;  %v560_v62 = vsel %vm528_vm6, %v458_v53, %v544_v57 }
 0x1db   :  { %vm531_vm7 = vcmp.gt.f32.partialorder %v473_v59, 0.0  ;;  %v547_v63 = vmul.f32 %v473_v59, %v3337_v39  ;;  %2636 = vmatprep.mubr.msk.f32.mxu1 %vm332_vm3, %v560_v62 }
 0x1dc   :  { %vm530_vm8 = vcmp.gt.f32.partialorder %v468_v61, 0.0  ;;  %v546_v1 = vmul.f32 %v468_v61, %v3337_v39  ;;  %v2612_v2 = vpop.f32.mrb[6].mxu1  ;;  %2637 = vmatmul.mubr.msk.f32.gmra.mrb[18].mxu1 %vm332_vm3, %v561_v0 }
 0x1dd   :  { %v483_v3 = vadd.f32 %v2612_v2, %v3396_v37  ;;  %v477_v4 = vpop.f32.mrb[7].mxu1  ;;  %v563_v5 = vsel %vm531_vm7, %v473_v59, %v547_v63 }
 0x1de   :  { %v478_v6 = vadd.f32 %v3396_v37, %v477_v4  ;;  %v562_v7 = vsel %vm530_vm8, %v468_v61, %v546_v1 }
 0x1df   :  { %vm533_vm9 = vcmp.gt.f32.partialorder %v483_v3, 0.0  ;;  %v549_v8 = vmul.f32 %v483_v3, %v3337_v39  ;;  %2639 = vmatprep.mubr.msk.f32.mxu1 %vm332_vm3, %v562_v7 }
 0x1e0   :  { %vm532_vm10 = vcmp.gt.f32.partialorder %v478_v6, 0.0  ;;  %v548_v9 = vmul.f32 %v478_v6, %v3337_v39  ;;  %v2615_v10 = vpop.f32.mrb[8].mxu1  ;;  %2640 = vmatmul.mubr.msk.f32.gmra.mrb[20].mxu1 %vm332_vm3, %v563_v5 }
 0x1e1   :  { %v493_v11 = vadd.f32 %v2615_v10, %v3396_v37  ;;  %v487_v12 = vpop.f32.mrb[9].mxu1  ;;  %v565_v13 = vsel %vm533_vm9, %v483_v3, %v549_v8 }
 0x1e2   :  { %v488_v14 = vadd.f32 %v3396_v37, %v487_v12  ;;  %v564_v15 = vsel %vm532_vm10, %v478_v6, %v548_v9 }
 0x1e3   :  { %vm535_vm11 = vcmp.gt.f32.partialorder %v493_v11, 0.0  ;;  %v551_v16 = vmul.f32 %v493_v11, %v3337_v39  ;;  %2642 = vmatprep.mubr.msk.f32.mxu1 %vm332_vm3, %v564_v15 }
 0x1e4   :  { %vm534_vm12 = vcmp.gt.f32.partialorder %v488_v14, 0.0  ;;  %v550_v17 = vmul.f32 %v488_v14, %v3337_v39  ;;  %v2618_v18 = vpop.f32.mrb[10].mxu1  ;;  %2643 = vmatmul.mubr.msk.f32.gmra.mrb[22].mxu1 %vm332_vm3, %v565_v13 }
 0x1e5   :  { %v503_v19 = vadd.f32 %v2618_v18, %v3396_v37  ;;  %v497_v20 = vpop.f32.mrb[11].mxu1  ;;  %v567_v21 = vsel %vm535_vm11, %v493_v11, %v551_v16 }
 0x1e6   :  { %v498_v22 = vadd.f32 %v3396_v37, %v497_v20  ;;  %v566_v23 = vsel %vm534_vm12, %v488_v14, %v550_v17 }
 0x1e7   :  { %vm537_vm13 = vcmp.gt.f32.partialorder %v503_v19, 0.0  ;;  %v553_v24 = vmul.f32 %v503_v19, %v3337_v39  ;;  %2645 = vmatprep.mubr.msk.f32.mxu1 %vm332_vm3, %v566_v23 }
 0x1e8   :  { %vm536_vm14 = vcmp.gt.f32.partialorder %v498_v22, 0.0  ;;  %v552_v25 = vmul.f32 %v498_v22, %v3337_v39  ;;  %v2621_v26 = vpop.f32.mrb[12].mxu1  ;;  %2646 = vmatmul.mubr.msk.f32.gmra.mrb[24].mxu1 %vm332_vm3, %v567_v21 }
 0x1e9   :  { %v513_v27 = vadd.f32 %v2621_v26, %v3396_v37  ;;  %v507_v28 = vpop.f32.mrb[13].mxu1  ;;  %v569_v29 = vsel %vm537_vm13, %v503_v19, %v553_v24 }
 0x1ea   :  { %v508_v30 = vadd.f32 %v3396_v37, %v507_v28  ;;  %v568_v31 = vsel %vm536_vm14, %v498_v22, %v552_v25 }
 0x1eb   :  { %vm539_vm15 = vcmp.gt.f32.partialorder %v513_v27, 0.0  ;;  %v555_v32 = vmul.f32 %v513_v27, %v3337_v39  ;;  %2648 = vmatprep.mubr.msk.f32.mxu1 %vm332_vm3, %v568_v31 }
 0x1ec   :  { %vm538_vm0 = vcmp.gt.f32.partialorder %v508_v30, 0.0  ;;  %v554_v33 = vmul.f32 %v508_v30, %v3337_v39  ;;  %v2624_v34 = vpop.f32.mrb[14].mxu1  ;;  %2649 = vmatmul.mubr.msk.f32.gmra.mrb[26].mxu1 %vm332_vm3, %v569_v29 }
 0x1ed   :  { %v523_v35 = vadd.f32 %v2624_v34, %v3396_v37  ;;  %v517_v36 = vpop.f32.mrb[15].mxu1  ;;  %v571_v38 = vsel %vm539_vm15, %v513_v27, %v555_v32 }
 0x1ee   :  { %v518_v40 = vadd.f32 %v3396_v37, %v517_v36  ;;  %v570_v41 = vsel %vm538_vm0, %v508_v30, %v554_v33  ;;  %v3449_v37 = vld [vmem:[%s4890_s8] ss:$0 sm:$0xff]  ;;  %s2325_s8 = sld [smem:[#allocation2 + $0x1]] }
 0x1ef   :  { %vm541_vm1 = vcmp.gt.f32.partialorder %v523_v35, 0.0  ;;  %v557_v42 = vmul.f32 %v523_v35, %v3337_v39  ;;  %2651 = vmatprep.mubr.msk.f32.mxu1 %vm332_vm3, %v570_v41 }
 0x1f0   :  { %vm540_vm2 = vcmp.gt.f32.partialorder %v518_v40, 0.0  ;;  %v556_v43 = vmul.f32 %v518_v40, %v3337_v39  ;;  %2652 = vmatmul.mubr.msk.f32.gmra.mrb[28].mxu1 %vm332_vm3, %v571_v38 }
 0x1f1   :  { %v573_v44 = vsel %vm541_vm1, %v523_v35, %v557_v42 }
 0x1f2   :  { %v572_v45 = vsel %vm540_vm2, %v518_v40, %v556_v43 }
 0x1f3   :  { %2654 = vmatprep.mubr.msk.f32.mxu1 %vm332_vm3, %v572_v45 }
 0x1f4   :  { %2655 = vmatmul.mubr.msk.f32.gmra.mrb[30].mxu1 %vm332_vm3, %v573_v44  ;;  %vm3762_vm3 = vmpackc.low %vm4892_vm4, %vm4892_vm4  ;;  %s1344_s12 = ssub.f32 1.0, %s2325_s8 }
 0x2ab   :  { %v2635_v46 = vpop.f32.mrb[16].mxu1 }
 0x2ac   :  { %v3452_v47 = vadd.f32 %v2635_v46, %v3449_v37  ;;  %v699_v48 = vpop.f32.mrb[17].mxu1 }
 0x2ad   :  { %v3455_v49 = vadd.f32 %v3449_v37, %v699_v48 }
 0x2ae   :  { %4924 = vst [vmem:[#allocation5_spill] sm:$0xff] %v3452_v47  ;;  %v817_v58 = vsel %vm4892_vm4, %v3452_v47, -inf }
 0x2af   :  { %4925 = vst [vmem:[#allocation6_spill] sm:$0xff] %v3455_v49  ;;  %v2638_v50 = vpop.f32.mrb[18].mxu1  ;;  %v814_v51 = vsel %vm4892_vm4, %v3455_v49, -inf  ;;  %v3461_v52 = vpack.c.bf16 %v3452_v47, %v3455_v49 }
 0x2b0   :  { %v3464_v53 = vadd.f32 %v2638_v50, %v3449_v37  ;;  %v709_v54 = vpop.f32.mrb[19].mxu1  ;;  %815 = vmax.xlane.f32.xlu0 %v814_v51 }
 0x2b1   :  { %v3467_v55 = vadd.f32 %v3449_v37, %v709_v54  ;;  %2905 = vmatprep.subr.bf16.mxu1 %v3461_v52 }
 0x2b2   :  { %4926 = vst [vmem:[#allocation7_spill] sm:$0xff] %v3464_v53  ;;  %2913 = vmatpush3.bf16.msra.mxu1 %v3461_v52  ;;  %v823_v0 = vsel %vm4892_vm4, %v3464_v53, -inf }
 0x2b3   :  { %4927 = vst [vmem:[#allocation8_spill] sm:$0xff] %v3467_v55  ;;  %v2641_v56 = vpop.f32.mrb[20].mxu1  ;;  %v820_v57 = vsel %vm4892_vm4, %v3467_v55, -inf  ;;  %v3477_v59 = vpack.c.bf16 %v3464_v53, %v3467_v55 }
 0x2b4   :  { %v3480_v60 = vadd.f32 %v2641_v56, %v3449_v37  ;;  %v719_v61 = vpop.f32.mrb[21].mxu1  ;;  %821 = vmax.xlane.f32.xlu1 %v820_v57  ;;  %818 = vmax.xlane.f32.xlu0 %v817_v58 }
 0x2b5   :  { %v3483_v62 = vadd.f32 %v3449_v37, %v719_v61  ;;  %2906 = vmatprep.subr.bf16.mxu1 %v3477_v59 }
 0x2b6   :  { %4928 = vst [vmem:[#allocation9_spill] sm:$0xff] %v3480_v60  ;;  %2914 = vmatpush3.bf16.msra.mxu1 %v3477_v59  ;;  %v829_v6 = vsel %vm4892_vm4, %v3480_v60, -inf }
 0x2b7   :  { %4929 = vst [vmem:[#allocation10_spill] sm:$0xff] %v3483_v62  ;;  %v2644_v63 = vpop.f32.mrb[22].mxu1  ;;  %v826_v1 = vsel %vm4892_vm4, %v3483_v62, -inf  ;;  %v3493_v2 = vpack.c.bf16 %v3480_v60, %v3483_v62 }
 0x2b8   :  { %v729_v3 = vpop.f32.mrb[23].mxu1  ;;  %824 = vmax.xlane.f32.xlu1 %v823_v0  ;;  %827 = vmax.xlane.f32.xlu0 %v826_v1  ;;  %v3496_v4 = vadd.f32 %v2644_v63, %v3449_v37 }
 0x2b9   :  { %v3499_v5 = vadd.f32 %v3449_v37, %v729_v3  ;;  %2907 = vmatprep.subr.bf16.mxu1 %v3493_v2 }
 0x2ba   :  { %4930 = vst [vmem:[#allocation11_spill] sm:$0xff] %v3496_v4  ;;  %2915 = vmatpush3.bf16.msra.mxu1 %v3493_v2  ;;  %v835_v13 = vsel %vm4892_vm4, %v3496_v4, -inf }
 0x2bb   :  { %4931 = vst [vmem:[#allocation12_spill] sm:$0xff] %v3499_v5  ;;  %v2647_v7 = vpop.f32.mrb[24].mxu1  ;;  %v832_v8 = vsel %vm4892_vm4, %v3499_v5, -inf  ;;  %v3509_v9 = vpack.c.bf16 %v3496_v4, %v3499_v5 }
 0x2bc   :  { %v739_v10 = vpop.f32.mrb[25].mxu1  ;;  %830 = vmax.xlane.f32.xlu1 %v829_v6  ;;  %833 = vmax.xlane.f32.xlu0 %v832_v8  ;;  %v3512_v11 = vadd.f32 %v2647_v7, %v3449_v37 }
 0x2bd   :  { %v3515_v12 = vadd.f32 %v3449_v37, %v739_v10  ;;  %2908 = vmatprep.subr.bf16.mxu1 %v3509_v9 }
 0x2be   :  { %4932 = vst [vmem:[#allocation13_spill] sm:$0xff] %v3512_v11  ;;  %2916 = vmatpush3.bf16.msra.mxu1 %v3509_v9  ;;  %v841_v20 = vsel %vm4892_vm4, %v3512_v11, -inf }
 0x2bf   :  { %4933 = vst [vmem:[#allocation14_spill] sm:$0xff] %v3515_v12  ;;  %v2650_v14 = vpop.f32.mrb[26].mxu1  ;;  %v838_v15 = vsel %vm4892_vm4, %v3515_v12, -inf  ;;  %v3525_v16 = vpack.c.bf16 %v3512_v11, %v3515_v12 }
 0x2c0   :  { %v749_v17 = vpop.f32.mrb[27].mxu1  ;;  %836 = vmax.xlane.f32.xlu1 %v835_v13  ;;  %839 = vmax.xlane.f32.xlu0 %v838_v15  ;;  %v3528_v18 = vadd.f32 %v2650_v14, %v3449_v37 }
 0x2c1   :  { %v3531_v19 = vadd.f32 %v3449_v37, %v749_v17  ;;  %2909 = vmatprep.subr.bf16.mxu1 %v3525_v16 }
 0x2c2   :  { %4934 = vst [vmem:[#allocation15_spill] sm:$0xff] %v3528_v18  ;;  %2917 = vmatpush3.bf16.msra.mxu1 %v3525_v16  ;;  %v847_v27 = vsel %vm4892_vm4, %v3528_v18, -inf }
 0x2c3   :  { %4935 = vst [vmem:[#allocation16_spill] sm:$0xff] %v3531_v19  ;;  %v2653_v21 = vpop.f32.mrb[28].mxu1  ;;  %v844_v22 = vsel %vm4892_vm4, %v3531_v19, -inf  ;;  %v3541_v23 = vpack.c.bf16 %v3528_v18, %v3531_v19 }
 0x2c4   :  { %v759_v24 = vpop.f32.mrb[29].mxu1  ;;  %842 = vmax.xlane.f32.xlu1 %v841_v20  ;;  %845 = vmax.xlane.f32.xlu0 %v844_v22  ;;  %v3544_v25 = vadd.f32 %v2653_v21, %v3449_v37 }
 0x2c5   :  { %v3547_v26 = vadd.f32 %v3449_v37, %v759_v24  ;;  %2910 = vmatprep.subr.bf16.mxu1 %v3541_v23 }
 0x2c6   :  { %4936 = vst [vmem:[#allocation17_spill] sm:$0xff] %v3544_v25  ;;  %2918 = vmatpush3.bf16.msra.mxu1 %v3541_v23  ;;  %v853_v34 = vsel %vm4892_vm4, %v3544_v25, -inf }
 0x2c7   :  { %4937 = vst [vmem:[#allocation18_spill] sm:$0xff] %v3547_v26  ;;  %v2656_v28 = vpop.f32.mrb[30].mxu1  ;;  %v850_v29 = vsel %vm4892_vm4, %v3547_v26, -inf  ;;  %v3557_v30 = vpack.c.bf16 %v3544_v25, %v3547_v26 }
 0x2c8   :  { %v769_v31 = vpop.f32.mrb[31].mxu1  ;;  %848 = vmax.xlane.f32.xlu1 %v847_v27  ;;  %851 = vmax.xlane.f32.xlu0 %v850_v29  ;;  %v3560_v32 = vadd.f32 %v2656_v28, %v3449_v37 }
 0x2c9   :  { %v3563_v33 = vadd.f32 %v3449_v37, %v769_v31  ;;  %2911 = vmatprep.subr.bf16.mxu1 %v3557_v30 }
 0x2ca   :  { %4938 = vst [vmem:[#allocation19_spill] sm:$0xff] %v3560_v32  ;;  %2919 = vmatpush3.bf16.msra.mxu1 %v3557_v30  ;;  %v859_v38 = vsel %vm4892_vm4, %v3560_v32, -inf }
 0x2cb   :  { %4939 = vst [vmem:[#allocation20_spill] sm:$0xff] %v3563_v33  ;;  %v856_v35 = vsel %vm4892_vm4, %v3563_v33, -inf  ;;  %v3573_v36 = vpack.c.bf16 %v3560_v32, %v3563_v33 }
 0x2cc   :  { %854 = vmax.xlane.f32.xlu1 %v853_v34  ;;  %857 = vmax.xlane.f32.xlu0 %v856_v35 }
 0x2cd   :  { %2912 = vmatprep.subr.bf16.mxu1 %v3573_v36 }
 0x2ce   :  { %2920 = vmatpush3.bf16.msra.mxu1 %v3573_v36 }
 0x2d0   :  { %860 = vmax.xlane.f32.xlu1 %v859_v38 }
 0x33d   :  { %v816_v40 = vpop.xlane.xlu0 %815 }
 0x33e   :  { %v862_v41 = vsub.f32 %v3455_v49, %v816_v40 }
 0x340   :  { %v878_v42 = vmul.f32 1.442695, %v862_v41 }
 0x341   :  { %v822_v43 = vpop.xlane.xlu1 %821  ;;  %v819_v44 = vpop.xlane.xlu0 %818 }
 0x342   :  { %2930 = vpow2.f32 %v878_v42  ;;  %v864_v45 = vsub.f32 %v3467_v55, %v822_v43  ;;  %v863_v37 = vsub.f32 %v3452_v47, %v819_v44 }
 0x344   :  { %v882_v46 = vmul.f32 1.442695, %v864_v45  ;;  %v880_v48 = vmul.f32 1.442695, %v863_v37 }
 0x345   :  { %v825_v50 = vpop.xlane.xlu1 %824  ;;  %v828_v51 = vpop.xlane.xlu0 %827 }
 0x346   :  { %2932 = vpow2.f32 %v882_v46  ;;  %v865_v54 = vsub.f32 %v3464_v53, %v825_v50  ;;  %v866_v56 = vsub.f32 %v3483_v62, %v828_v51 }
 0x347   :  { %2934 = vpow2.f32 %v880_v48 }
 0x348   :  { %v884_v57 = vmul.f32 1.442695, %v865_v54  ;;  %v886_v58 = vmul.f32 1.442695, %v866_v56 }
 0x349   :  { %v831_v61 = vpop.xlane.xlu1 %830  ;;  %v834_v63 = vpop.xlane.xlu0 %833 }
 0x34a   :  { %2936 = vpow2.f32 %v884_v57  ;;  %v867_v0 = vsub.f32 %v3480_v60, %v831_v61  ;;  %v868_v1 = vsub.f32 %v3499_v5, %v834_v63 }
 0x34b   :  { %2938 = vpow2.f32 %v886_v58 }
 0x34c   :  { %v3586_v3 = vpop.eup %2930  ;;  %v888_v6 = vmul.f32 1.442695, %v867_v0  ;;  %v890_v7 = vmul.f32 1.442695, %v868_v1 }
 0x34d   :  { %v837_v8 = vpop.xlane.xlu1 %836  ;;  %v840_v10 = vpop.xlane.xlu0 %839  ;;  %v910_v13 = vsel %vm4892_vm4, %v3586_v3, 0.0 }
 0x34e   :  { %2940 = vpow2.f32 %v888_v6  ;;  %v869_v14 = vsub.f32 %v3496_v4, %v837_v8  ;;  %v870_v15 = vsub.f32 %v3515_v12, %v840_v10  ;;  %911 = vadd.xlane.f32.xlu0 %v910_v13 }
 0x34f   :  { %2942 = vpow2.f32 %v890_v7 }
 0x350   :  { %v3592_v17 = vpop.eup %2932  ;;  %v892_v20 = vmul.f32 1.442695, %v869_v14  ;;  %v894_v21 = vmul.f32 1.442695, %v870_v15 }
 0x351   :  { %v3594_v22 = vpop.eup %2934  ;;  %v843_v24 = vpop.xlane.xlu1 %842  ;;  %v916_v28 = vsel %vm4892_vm4, %v3592_v17, 0.0 }
 0x352   :  { %v846_v27 = vpop.xlane.xlu0 %845  ;;  %2944 = vpow2.f32 %v892_v20  ;;  %v871_v29 = vsub.f32 %v3512_v11, %v843_v24  ;;  %917 = vadd.xlane.f32.xlu0 %v916_v28  ;;  %v913_v34 = vsel %vm4892_vm4, %v3594_v22, 0.0 }
 0x353   :  { %v872_v31 = vsub.f32 %v3531_v19, %v846_v27  ;;  %2946 = vpow2.f32 %v894_v21  ;;  %914 = vadd.xlane.f32.xlu1 %v913_v34 }
 0x354   :  { %v3602_v35 = vpop.eup %2936  ;;  %v896_v38 = vmul.f32 1.442695, %v871_v29 }
 0x355   :  { %v898_v40 = vmul.f32 1.442695, %v872_v31  ;;  %v3604_v41 = vpop.eup %2938  ;;  %v849_v42 = vpop.xlane.xlu1 %848  ;;  %v919_v44 = vsel %vm4892_vm4, %v3602_v35, 0.0 }
 0x356   :  { %v852_v43 = vpop.xlane.xlu0 %851  ;;  %2948 = vpow2.f32 %v896_v38  ;;  %v873_v45 = vsub.f32 %v3528_v18, %v849_v42  ;;  %v922_v46 = vsel %vm4892_vm4, %v3604_v41, 0.0 }
 0x357   :  { %v874_v37 = vsub.f32 %v3547_v26, %v852_v43  ;;  %2950 = vpow2.f32 %v898_v40  ;;  %920 = vadd.xlane.f32.xlu1 %v919_v44  ;;  %923 = vadd.xlane.f32.xlu0 %v922_v46 }
 0x358   :  { %v3612_v48 = vpop.eup %2940  ;;  %v900_v50 = vmul.f32 1.442695, %v873_v45 }
 0x359   :  { %v902_v51 = vmul.f32 1.442695, %v874_v37  ;;  %v3614_v54 = vpop.eup %2942  ;;  %v855_v56 = vpop.xlane.xlu1 %854  ;;  %v925_v58 = vsel %vm4892_vm4, %v3612_v48, 0.0 }
 0x35a   :  { %v858_v57 = vpop.xlane.xlu0 %857  ;;  %2952 = vpow2.f32 %v900_v50  ;;  %v875_v61 = vsub.f32 %v3544_v25, %v855_v56  ;;  %v928_v0 = vsel %vm4892_vm4, %v3614_v54, 0.0 }
 0x35b   :  { %v876_v63 = vsub.f32 %v3563_v33, %v858_v57  ;;  %2954 = vpow2.f32 %v902_v51  ;;  %926 = vadd.xlane.f32.xlu1 %v925_v58  ;;  %929 = vadd.xlane.f32.xlu0 %v928_v0 }
 0x35c   :  { %v3622_v1 = vpop.eup %2944  ;;  %v904_v6 = vmul.f32 1.442695, %v875_v61 }
 0x35d   :  { %v906_v7 = vmul.f32 1.442695, %v876_v63  ;;  %v3624_v8 = vpop.eup %2946  ;;  %v861_v10 = vpop.xlane.xlu1 %860  ;;  %v931_v13 = vsel %vm4892_vm4, %v3622_v1, 0.0 }
 0x35e   :  { %2956 = vpow2.f32 %v904_v6  ;;  %v877_v14 = vsub.f32 %v3560_v32, %v861_v10  ;;  %v934_v15 = vsel %vm4892_vm4, %v3624_v8, 0.0 }
 0x35f   :  { %2958 = vpow2.f32 %v906_v7  ;;  %932 = vadd.xlane.f32.xlu1 %v931_v13  ;;  %935 = vadd.xlane.f32.xlu0 %v934_v15 }
 0x360   :  { %v3631_v20 = vpop.eup %2948  ;;  %v908_v21 = vmul.f32 1.442695, %v877_v14 }
 0x361   :  { %v3633_v24 = vpop.eup %2950  ;;  %v937_v27 = vsel %vm4892_vm4, %v3631_v20, 0.0 }
 0x362   :  { %2960 = vpow2.f32 %v908_v21  ;;  %v940_v28 = vsel %vm4892_vm4, %v3633_v24, 0.0 }
 0x363   :  { %938 = vadd.xlane.f32.xlu1 %v937_v27  ;;  %941 = vadd.xlane.f32.xlu0 %v940_v28 }
 0x364   :  { %v3639_v29 = vpop.eup %2952 }
 0x365   :  { %v3641_v31 = vpop.eup %2954  ;;  %v943_v34 = vsel %vm4892_vm4, %v3639_v29, 0.0 }
 0x366   :  { %v946_v38 = vsel %vm4892_vm4, %v3641_v31, 0.0 }
 0x367   :  { %944 = vadd.xlane.f32.xlu1 %v943_v34  ;;  %947 = vadd.xlane.f32.xlu0 %v946_v38 }
 0x368   :  { %v3647_v40 = vpop.eup %2956 }
 0x369   :  { %v3649_v42 = vpop.eup %2958  ;;  %v949_v43 = vsel %vm4892_vm4, %v3647_v40, 0.0 }
 0x36a   :  { %v952_v44 = vsel %vm4892_vm4, %v3649_v42, 0.0 }
 0x36b   :  { %950 = vadd.xlane.f32.xlu1 %v949_v43  ;;  %953 = vadd.xlane.f32.xlu0 %v952_v44 }
 0x36c   :  { %v3655_v45 = vpop.eup %2960 }
 0x36d   :  { %v955_v37 = vsel %vm4892_vm4, %v3655_v45, 0.0 }
 0x36f   :  { %956 = vadd.xlane.f32.xlu1 %v955_v37 }
 0x3db   :  { %v912_v46 = vpop.xlane.xlu0 %911 }
 0x3dc   :  { %2962 = vrcp.f32 %v912_v46 }
 0x3df   :  { %v918_v50 = vpop.xlane.xlu0 %917 }
 0x3e0   :  { %v915_v51 = vpop.xlane.xlu1 %914  ;;  %2964 = vrcp.f32 %v918_v50 }
 0x3e1   :  { %2966 = vrcp.f32 %v915_v51 }
 0x3e4   :  { %v921_v56 = vpop.xlane.xlu1 %920  ;;  %v924_v57 = vpop.xlane.xlu0 %923 }
 0x3e5   :  { %2968 = vrcp.f32 %v921_v56 }
 0x3e6   :  { %v2963_v58 = vpop.eup %2962  ;;  %2970 = vrcp.f32 %v924_v57 }
 0x3e7   :  { %v3660_v61 = vmul.f32 %v2963_v58, %v3586_v3 }
 0x3e8   :  { %v927_v63 = vpop.xlane.xlu1 %926  ;;  %v930_v0 = vpop.xlane.xlu0 %929 }
 0x3e9   :  { %2972 = vrcp.f32 %v927_v63  ;;  %v990_v6 = vmul.f32 %v3660_v61, %v3660_v61 }
 0x3ea   :  { %v2965_v7 = vpop.eup %2964  ;;  %2974 = vrcp.f32 %v930_v0 }
 0x3eb   :  { %v2967_v10 = vpop.eup %2966  ;;  %v1006_v13 = vsel %vm4892_vm4, %v990_v6, 0.0  ;;  %v3666_v14 = vmul.f32 %v2965_v7, %v3592_v17 }
 0x3ec   :  { %v933_v15 = vpop.xlane.xlu1 %932  ;;  %v936_v21 = vpop.xlane.xlu0 %935  ;;  %1007 = vadd.xlane.f32.xlu0 %v1006_v13  ;;  %v3669_v3 = vmul.f32 %v2967_v10, %v3594_v22 }
 0x3ed   :  { %2976 = vrcp.f32 %v933_v15  ;;  %v992_v27 = vmul.f32 %v3666_v14, %v3666_v14 }
 0x3ee   :  { %2978 = vrcp.f32 %v936_v21  ;;  %v991_v28 = vmul.f32 %v3669_v3, %v3669_v3 }
 0x3ef   :  { %v2969_v34 = vpop.eup %2968  ;;  %v1012_v38 = vsel %vm4892_vm4, %v992_v27, 0.0 }
 0x3f0   :  { %v2971_v43 = vpop.eup %2970  ;;  %v939_v17 = vpop.xlane.xlu1 %938  ;;  %v1009_v37 = vsel %vm4892_vm4, %v991_v28, 0.0  ;;  %1013 = vadd.xlane.f32.xlu0 %v1012_v38  ;;  %v3678_v22 = vmul.f32 %v2969_v34, %v3602_v35 }
 0x3f1   :  { %v942_v44 = vpop.xlane.xlu0 %941  ;;  %2980 = vrcp.f32 %v939_v17  ;;  %1010 = vadd.xlane.f32.xlu1 %v1009_v37  ;;  %v3681_v46 = vmul.f32 %v2971_v43, %v3604_v41 }
 0x3f2   :  { %2982 = vrcp.f32 %v942_v44  ;;  %v993_v50 = vmul.f32 %v3678_v22, %v3678_v22 }
 0x3f3   :  { %v2973_v51 = vpop.eup %2972  ;;  %v994_v56 = vmul.f32 %v3681_v46, %v3681_v46 }
 0x3f4   :  { %v2975_v57 = vpop.eup %2974  ;;  %v945_v58 = vpop.xlane.xlu1 %944  ;;  %v1015_v0 = vsel %vm4892_vm4, %v993_v50, 0.0  ;;  %v3689_v35 = vmul.f32 %v2973_v51, %v3612_v48 }
 0x3f5   :  { %v948_v63 = vpop.xlane.xlu0 %947  ;;  %2984 = vrcp.f32 %v945_v58  ;;  %1016 = vadd.xlane.f32.xlu1 %v1015_v0  ;;  %v1018_v41 = vsel %vm4892_vm4, %v994_v56, 0.0  ;;  %v3693_v6 = vmul.f32 %v2975_v57, %v3614_v54 }
 0x3f6   :  { %2986 = vrcp.f32 %v948_v63  ;;  %1019 = vadd.xlane.f32.xlu0 %v1018_v41  ;;  %v995_v7 = vmul.f32 %v3689_v35, %v3689_v35 }
 0x3f7   :  { %v2977_v10 = vpop.eup %2976  ;;  %v996_v13 = vmul.f32 %v3693_v6, %v3693_v6 }
 0x3f8   :  { %v2979_v15 = vpop.eup %2978  ;;  %v951_v21 = vpop.xlane.xlu1 %950  ;;  %v1021_v27 = vsel %vm4892_vm4, %v995_v7, 0.0  ;;  %v3701_v28 = vmul.f32 %v2977_v10, %v3622_v1 }
 0x3f9   :  { %v954_v48 = vpop.xlane.xlu0 %953  ;;  %2988 = vrcp.f32 %v951_v21  ;;  %1022 = vadd.xlane.f32.xlu1 %v1021_v27  ;;  %v1024_v54 = vsel %vm4892_vm4, %v996_v13, 0.0  ;;  %v3705_v34 = vmul.f32 %v2979_v15, %v3624_v8 }
 0x3fa   :  { %2990 = vrcp.f32 %v954_v48  ;;  %1025 = vadd.xlane.f32.xlu0 %v1024_v54  ;;  %v997_v38 = vmul.f32 %v3701_v28, %v3701_v28 }
 0x3fb   :  { %v2981_v43 = vpop.eup %2980  ;;  %v998_v17 = vmul.f32 %v3705_v34, %v3705_v34 }
 0x3fc   :  { %v2983_v44 = vpop.eup %2982  ;;  %v957_v37 = vpop.xlane.xlu1 %956  ;;  %v1027_v1 = vsel %vm4892_vm4, %v997_v38, 0.0  ;;  %v3713_v50 = vmul.f32 %v2981_v43, %v3631_v20 }
 0x3fd   :  { %2992 = vrcp.f32 %v957_v37  ;;  %1028 = vadd.xlane.f32.xlu1 %v1027_v1  ;;  %v1030_v8 = vsel %vm4892_vm4, %v998_v17, 0.0  ;;  %v3717_v51 = vmul.f32 %v2983_v44, %v3633_v24 }
 0x3fe   :  { %1031 = vadd.xlane.f32.xlu0 %v1030_v8  ;;  %v999_v56 = vmul.f32 %v3713_v50, %v3713_v50 }
 0x3ff   :  { %v2985_v57 = vpop.eup %2984  ;;  %v1000_v58 = vmul.f32 %v3717_v51, %v3717_v51 }
 0x400   :  { %v2987_v63 = vpop.eup %2986  ;;  %v1033_v0 = vsel %vm4892_vm4, %v999_v56, 0.0  ;;  %v3725_v20 = vmul.f32 %v2985_v57, %v3639_v29 }
 0x401   :  { %1034 = vadd.xlane.f32.xlu1 %v1033_v0  ;;  %v1036_v41 = vsel %vm4892_vm4, %v1000_v58, 0.0  ;;  %v3729_v24 = vmul.f32 %v2987_v63, %v3641_v31 }
 0x402   :  { %1037 = vadd.xlane.f32.xlu0 %v1036_v41  ;;  %v1001_v7 = vmul.f32 %v3725_v20, %v3725_v20 }
 0x403   :  { %v2989_v10 = vpop.eup %2988  ;;  %v1002_v13 = vmul.f32 %v3729_v24, %v3729_v24 }
 0x404   :  { %v2991_v15 = vpop.eup %2990  ;;  %v1039_v21 = vsel %vm4892_vm4, %v1001_v7, 0.0  ;;  %v3737_v29 = vmul.f32 %v2989_v10, %v3647_v40 }
 0x405   :  { %1040 = vadd.xlane.f32.xlu1 %v1039_v21  ;;  %v1042_v48 = vsel %vm4892_vm4, %v1002_v13, 0.0  ;;  %v3741_v31 = vmul.f32 %v2991_v15, %v3649_v42 }
 0x406   :  { %1043 = vadd.xlane.f32.xlu0 %v1042_v48  ;;  %v1003_v27 = vmul.f32 %v3737_v29, %v3737_v29 }
 0x407   :  { %v2993_v54 = vpop.eup %2992  ;;  %v1004_v38 = vmul.f32 %v3741_v31, %v3741_v31 }
 0x408   :  { %v1045_v43 = vsel %vm4892_vm4, %v1003_v27, 0.0  ;;  %v3749_v17 = vmul.f32 %v2993_v54, %v3655_v45 }
 0x409   :  { %1046 = vadd.xlane.f32.xlu1 %v1045_v43  ;;  %v1048_v40 = vsel %vm4892_vm4, %v1004_v38, 0.0 }
 0x40a   :  { %1049 = vadd.xlane.f32.xlu0 %v1048_v40  ;;  %v1005_v42 = vmul.f32 %v3749_v17, %v3749_v17 }
 0x40c   :  { %v1051_v44 = vsel %vm4892_vm4, %v1005_v42, 0.0 }
 0x40d   :  { %1052 = vadd.xlane.f32.xlu1 %v1051_v44 }
 0x479   :  { %v1008_v37 = vpop.xlane.xlu0 %1007 }
 0x47a   :  { %v1054_v1 = vmax.f32 %v1008_v37, 1e-18 }
 0x47c   :  { %2994 = vrsqrt.f32 %v1054_v1 }
 0x47d   :  { %v1014_v8 = vpop.xlane.xlu0 %1013 }
 0x47e   :  { %v1011_v56 = vpop.xlane.xlu1 %1010  ;;  %v1056_v58 = vmax.f32 %v1014_v8, 1e-18 }
 0x47f   :  { %v1055_v57 = vmax.f32 %v1011_v56, 1e-18 }
 0x481   :  { %2996 = vrsqrt.f32 %v1055_v57 }
 0x482   :  { %v1017_v45 = vpop.xlane.xlu1 %1016  ;;  %2998 = vrsqrt.f32 %v1056_v58 }
 0x483   :  { %v1057_v63 = vmax.f32 %v1017_v45, 1e-18  ;;  %v1020_v0 = vpop.xlane.xlu0 %1019 }
 0x484   :  { %v1058_v41 = vmax.f32 %v1020_v0, 1e-18 }
 0x485   :  { %3000 = vrsqrt.f32 %v1057_v63 }
 0x486   :  { %v2995_v7 = vpop.eup %2994  ;;  %v1023_v10 = vpop.xlane.xlu1 %1022  ;;  %3002 = vrsqrt.f32 %v1058_v41 }
 0x487   :  { %v1059_v13 = vmax.f32 %v1023_v10, 1e-18  ;;  %v1086_v15 = vmul.f32 %v2995_v7, %v3660_v61  ;;  %v1026_v21 = vpop.xlane.xlu0 %1025 }
 0x488   :  { %v1060_v40 = vmax.f32 %v1026_v21, 1e-18 }
 0x489   :  { %3004 = vrsqrt.f32 %v1059_v13  ;;  %2689 = vmatprep.mubr.msk.f32.mxu0 %vm4892_vm4, %v1086_v15 }
 0x48a   :  { %v1029_v48 = vpop.xlane.xlu1 %1028 }
 0x48b   :  { %v2997_v27 = vpop.eup %2996  ;;  %v1061_v54 = vmax.f32 %v1029_v48, 1e-18  ;;  %v1032_v56 = vpop.xlane.xlu0 %1031 }
 0x48c   :  { %v3758_v38 = vmul.f32 %v2997_v27, %v3669_v3  ;;  %v2999_v43 = vpop.eup %2998  ;;  %v1062_v63 = vmax.f32 %v1032_v56, 1e-18 }
 0x48d   :  { %3006 = vrsqrt.f32 %v1061_v54  ;;  %v3770_v1 = vmul.f32 %v2999_v43, %v3666_v14 }
 0x48e   :  { %v2825_v61 = vpack.c.bf16 %v3758_v38, %v1086_v15  ;;  %v1035_v37 = vpop.xlane.xlu1 %1034  ;;  %3008 = vrsqrt.f32 %v1060_v40 }
 0x48f   :  { %v3001_v44 = vpop.eup %3000  ;;  %v1063_v45 = vmax.f32 %v1035_v37, 1e-18  ;;  %v1038_v10 = vpop.xlane.xlu0 %1037 }
 0x490   :  { %2827 = vmatprep.subr.msk.bf16.mxu0 %vm3762_vm3, %v2825_v61  ;;  %v3773_v3 = vmul.f32 %v3001_v44, %v3678_v22  ;;  %v3003_v8 = vpop.eup %3002 }
 0x491   :  { %2830 = vmatpush3.bf16.xpose.msk.msra.mxu0 %vm3762_vm3, %v2825_v61  ;;  %v3785_v22 = vmul.f32 %v3003_v8, %v3681_v46  ;;  %3010 = vrsqrt.f32 %v1063_v45  ;;  %v1064_v46 = vmax.f32 %v1038_v10, 1e-18 }
 0x492   :  { %v2831_v57 = vpack.c.bf16 %v3773_v3, %v3770_v1  ;;  %v1041_v0 = vpop.xlane.xlu1 %1040  ;;  %3012 = vrsqrt.f32 %v1062_v63 }
 0x493   :  { %v3005_v58 = vpop.eup %3004  ;;  %v1065_v13 = vmax.f32 %v1041_v0, 1e-18  ;;  %v1044_v43 = vpop.xlane.xlu0 %1043 }
 0x494   :  { %2833 = vmatprep.subr.msk.bf16.mxu0 %vm3762_vm3, %v2831_v57  ;;  %v3782_v14 = vmul.f32 %v3005_v58, %v3689_v35 }
 0x495   :  { %3014 = vrsqrt.f32 %v1065_v13 }
 0x496   :  { %v2837_v41 = vpack.c.bf16 %v3782_v14, %v3785_v22  ;;  %v1047_v48 = vpop.xlane.xlu1 %1046  ;;  %3016 = vrsqrt.f32 %v1064_v46 }
 0x497   :  { %v3007_v7 = vpop.eup %3006  ;;  %v1067_v61 = vmax.f32 %v1047_v48, 1e-18 }
 0x498   :  { %v3009_v35 = vpop.eup %3008  ;;  %v1093_v15 = vmul.f32 %v3007_v7, %v3701_v28  ;;  %v1066_v28 = vmax.f32 %v1044_v43, 1e-18 }
 0x499   :  { %2836 = vmatpush3.bf16.xpose.msk.msra.mxu0 %vm3762_vm3, %v2831_v57  ;;  %v1092_v21 = vmul.f32 %v3009_v35, %v3693_v6  ;;  %3018 = vrsqrt.f32 %v1067_v61  ;;  %v1050_v57 = vpop.xlane.xlu0 %1049 }
 0x49a   :  { %2839 = vmatprep.subr.msk.bf16.mxu0 %vm3762_vm3, %v2837_v41  ;;  %v1053_v6 = vpop.xlane.xlu1 %1052  ;;  %3020 = vrsqrt.f32 %v1066_v28 }
 0x49b   :  { %v2843_v27 = vpack.c.bf16 %v1093_v15, %v1092_v21  ;;  %v3011_v54 = vpop.eup %3010  ;;  %v1069_v45 = vmax.f32 %v1053_v6, 1e-18 }
 0x49c   :  { %v3013_v40 = vpop.eup %3012  ;;  %v1095_v44 = vmul.f32 %v3011_v54, %v3713_v50  ;;  %v1068_v50 = vmax.f32 %v1050_v57, 1e-18 }
 0x49d   :  { %v1094_v37 = vmul.f32 %v3013_v40, %v3705_v34  ;;  %3022 = vrsqrt.f32 %v1069_v45  ;;  %v1314_v40 = vld [vmem:[%s4884_s2 + $0x18] sm:$0xff] }
 0x49e   :  { %3024 = vrsqrt.f32 %v1068_v50 }
 0x49f   :  { %v2849_v8 = vpack.c.bf16 %v1095_v44, %v1094_v37  ;;  %v3015_v56 = vpop.eup %3014 }
 0x4a0   :  { %v3017_v58 = vpop.eup %3016  ;;  %v1097_v63 = vmul.f32 %v3015_v56, %v3725_v20  ;;  %v1315_v56 = vld [vmem:[%s4884_s2 + $0x20] sm:$0xff] }
 0x4a1   :  { %2842 = vmatpush3.bf16.xpose.msk.msra.mxu0 %vm3762_vm3, %v2837_v41  ;;  %v1096_v0 = vmul.f32 %v3017_v58, %v3717_v51 }
 0x4a2   :  { %2845 = vmatprep.subr.msk.bf16.mxu0 %vm3762_vm3, %v2843_v27 }
 0x4a3   :  { %v2855_v34 = vpack.c.bf16 %v1097_v63, %v1096_v0  ;;  %v3019_v41 = vpop.eup %3018 }
 0x4a4   :  { %v3021_v7 = vpop.eup %3020  ;;  %v1099_v10 = vmul.f32 %v3019_v41, %v3737_v29 }
 0x4a5   :  { %v1098_v35 = vmul.f32 %v3021_v7, %v3729_v24  ;;  %v3881_v24 = vstv %s1344_s12 }
 0x4a7   :  { %v2861_v13 = vpack.c.bf16 %v1099_v10, %v1098_v35  ;;  %v3023_v20 = vpop.eup %3022 }
 0x4a8   :  { %v3025_v51 = vpop.eup %3024  ;;  %v1101_v46 = vmul.f32 %v3023_v20, %v3749_v17 }
 0x4a9   :  { %2848 = vmatpush3.bf16.xpose.msk.msra.mxu0 %vm3762_vm3, %v2843_v27  ;;  %v1100_v48 = vmul.f32 %v3025_v51, %v3741_v31  ;;  %v1318_v51 = vld [vmem:[%s4884_s2 + $0x38] sm:$0xff] }
 0x4aa   :  { %2851 = vmatprep.subr.msk.bf16.mxu0 %vm3762_vm3, %v2849_v8 }
 0x4ab   :  { %v2867_v27 = vpack.c.bf16 %v1101_v46, %v1100_v48 }
 0x4b1   :  { %2854 = vmatpush3.bf16.xpose.msk.msra.mxu0 %vm3762_vm3, %v2849_v8  ;;  %v1316_v8 = vld [vmem:[%s4884_s2 + $0x28] sm:$0xff] }
 0x4b2   :  { %2857 = vmatprep.subr.msk.bf16.mxu0 %vm3762_vm3, %v2855_v34 }
 0x4b9   :  { %2860 = vmatpush3.bf16.xpose.msk.msra.mxu0 %vm3762_vm3, %v2855_v34 }
 0x4ba   :  { %2863 = vmatprep.subr.msk.bf16.mxu0 %vm3762_vm3, %v2861_v13 }
 0x4c1   :  { %2866 = vmatpush3.bf16.xpose.msk.msra.mxu0 %vm3762_vm3, %v2861_v13 }
 0x4c2   :  { %2869 = vmatprep.subr.msk.bf16.mxu0 %vm3762_vm3, %v2867_v27 }
 0x4c9   :  { %2872 = vmatpush3.bf16.xpose.msk.msra.mxu0 %vm3762_vm3, %v2867_v27 }
 0x4ca   :  { %2874 = vmatprep.subr.bf16.mxu0 %v3461_v52 }
 0x4d0   :  { %2690 = vmatmul.mubr.msk.f32.vlgmr.msra.gmra.mrb[16].mxu0 %vm4892_vm4, %v3758_v38 }
 0x4d1   :  { %2692 = vmatprep.mubr.msk.f32.mxu0 %vm4892_vm4, %v3770_v1  ;;  %2876 = vmatpush3.bf16.msra.mxu0 %v3461_v52  ;;  %v778_v52 = vlaneseq }
 0x4d2   :  { %2878 = vmatprep.subr.bf16.mxu0 %v3477_v59 }
 0x4d4   :  { %2693 = vmatmul.mubr.msk.f32.gmra.mrb[18].mxu0 %vm4892_vm4, %v3773_v3 }
 0x4d5   :  { %2695 = vmatprep.mubr.msk.f32.mxu0 %vm4892_vm4, %v3785_v22  ;;  %2880 = vmatpush3.bf16.msra.mxu0 %v3477_v59  ;;  %v3861_v59 = vshrl.u32 %v778_v52, 7  ;;  %v1313_v22 = vld [vmem:[%s4884_s2 + $0x10] sm:$0xff] }
 0x4d6   :  { %2882 = vmatprep.subr.bf16.mxu0 %v3493_v2 }
 0x4d7   :  { %v3886_v29 = vadd.s32 16, %v3861_v59  ;;  %v3909_v54 = vadd.s32 32, %v3861_v59  ;;  %v3934_v58 = vadd.s32 56, %v3861_v59  ;;  %v3937_v45 = vadd.s32 48, %v3861_v59 }
 0x4d8   :  { %2696 = vmatmul.mubr.msk.f32.gmra.mrb[20].mxu0 %vm4892_vm4, %v3782_v14 }
 0x4d9   :  { %2698 = vmatprep.mubr.msk.f32.mxu0 %vm4892_vm4, %v1092_v21  ;;  %2884 = vmatpush3.bf16.msra.mxu0 %v3493_v2  ;;  %v3864_v2 = vadd.s32 8, %v3861_v59 }
 0x4da   :  { %2886 = vmatprep.subr.bf16.mxu0 %v3509_v9 }
 0x4dc   :  { %2699 = vmatmul.mubr.msk.f32.gmra.mrb[22].mxu0 %vm4892_vm4, %v1093_v15  ;;  %v3903_v15 = vadd.s32 40, %v3861_v59 }
 0x4dd   :  { %2701 = vmatprep.mubr.msk.f32.mxu0 %vm4892_vm4, %v1094_v37  ;;  %2888 = vmatpush3.bf16.msra.mxu0 %v3509_v9  ;;  %v3866_v9 = vand.u32 127, %v778_v52  ;;  %v3970_v52 = vadd.s32 64, %v3861_v59 }
 0x4de   :  { %2890 = vmatprep.subr.bf16.mxu0 %v3525_v16  ;;  %4942 = vst [vmem:[#allocation21_spill] sm:$0xff] %v3903_v15 }
 0x4df   :  { %vm798_vm5 = vcmp.eq.s32.totalorder %v3864_v2, %v3866_v9  ;;  %vm797_vm6 = vcmp.eq.s32.totalorder %v3861_v59, %v3866_v9  ;;  %vm799_vm8 = vcmp.eq.s32.totalorder %v3886_v29, %v3866_v9  ;;  %vm4906_vm9 = vcmp.eq.s32.totalorder %v3903_v15, %v3866_v9 }
 0x4e0   :  { %2702 = vmatmul.mubr.msk.f32.gmra.mrb[24].mxu0 %vm4892_vm4, %v1095_v44  ;;  %vm801_vm10 = vcmp.eq.s32.totalorder %v3909_v54, %v3866_v9  ;;  %vm804_vm11 = vcmp.eq.s32.totalorder %v3934_v58, %v3866_v9  ;;  %vm803_vm12 = vcmp.eq.s32.totalorder %v3937_v45, %v3866_v9  ;;  %vm805_vm14 = vcmp.eq.s32.totalorder %v3970_v52, %v3866_v9 }
 0x4e1   :  { %2704 = vmatprep.mubr.msk.f32.mxu0 %vm4892_vm4, %v1096_v0  ;;  %2892 = vmatpush3.bf16.msra.mxu0 %v3525_v16  ;;  %v1312_v16 = vld [vmem:[%s4884_s2 + $0x8] sm:$0xff] }
 0x4e2   :  { %2894 = vmatprep.subr.bf16.mxu0 %v3541_v23 }
 0x4e4   :  { %2705 = vmatmul.mubr.msk.f32.gmra.mrb[26].mxu0 %vm4892_vm4, %v1097_v63 }
 0x4e5   :  { %2707 = vmatprep.mubr.msk.f32.mxu0 %vm4892_vm4, %v1098_v35  ;;  %2896 = vmatpush3.bf16.msra.mxu0 %v3541_v23  ;;  %v3873_v23 = vstv %s2325_s8  ;;  %v4951_v54 = vld [vmem:[#allocation21_spill] sm:$0xff] }
 0x4e6   :  { %2898 = vmatprep.subr.bf16.mxu0 %v3557_v30  ;;  %v1329_v38 = vmul.f32 %v3873_v23, %v1312_v16  ;;  %v1330_v6 = vmul.f32 %v3873_v23, %v1313_v22  ;;  %v1331_v63 = vmul.f32 %v3873_v23, %v1314_v40  ;;  %v1333_v41 = vmul.f32 %v3873_v23, %v1316_v8  ;;  %v1319_v40 = vld [vmem:[%s4884_s2 + $0x40] sm:$0xff] }
 0x4e7   :  { %v1332_v7 = vmul.f32 %v3873_v23, %v1315_v56 }
 0x4e8   :  { %2708 = vmatmul.mubr.msk.f32.gmra.mrb[28].mxu0 %vm4892_vm4, %v1099_v10 }
 0x4e9   :  { %2710 = vmatprep.mubr.msk.f32.mxu0 %vm4892_vm4, %v1100_v48  ;;  %2900 = vmatpush3.bf16.msra.mxu0 %v3557_v30  ;;  %v1311_v30 = vld [vmem:[%s4884_s2] sm:$0xff]  ;;  %v3960_v48 = vadd.s32 72, %v3861_v59 }
 0x4ea   :  { %2902 = vmatprep.subr.bf16.mxu0 %v3573_v36  ;;  %v1328_v1 = vmul.f32 %v3873_v23, %v1311_v30 }
 0x4eb   :  { %vm806_vm13 = vcmp.eq.s32.totalorder %v3960_v48, %v3866_v9 }
 0x4ec   :  { %2711 = vmatmul.mubr.msk.f32.gmra.mrb[30].mxu0 %vm4892_vm4, %v1101_v46  ;;  %v1317_v46 = vld [vmem:[%s4884_s2 + $0x30] sm:$0xff] }
 0x4ed   :  { %2904 = vmatpush3.bf16.msra.mxu0 %v3573_v36  ;;  %v3879_v36 = vadd.s32 24, %v3861_v59 }
 0x4ef   :  { %vm800_vm7 = vcmp.eq.s32.totalorder %v3879_v36, %v3866_v9 }
 0x5a3   :  { %v2691_v31 = vpop.f32.mrb[16].mxu0 }
 0x5a4   :  { %v1296_v17 = vsel %vm798_vm5, 0.0, %v2691_v31  ;;  %v1216_v42 = vpop.f32.mrb[17].mxu0 }
 0x5a5   :  { %v1347_v3 = vmul.f32 %v3881_v24, %v1296_v17  ;;  %v1295_v14 = vsel %vm797_vm6, 0.0, %v1216_v42  ;;  %v1335_v42 = vmul.f32 %v3873_v23, %v1318_v51  ;;  %v1321_v51 = vld [vmem:[%s4884_s2 + $0x50] sm:$0xff] }
 0x5a6   :  { %v1346_v21 = vmul.f32 %v3881_v24, %v1295_v14 }
 0x5a7   :  { %v2694_v43 = vpop.f32.mrb[18].mxu0  ;;  %v3914_v61 = vadd.f32 %v1347_v3, %v1329_v38 }
 0x5a8   :  { %v3916_v44 = vadd.f32 %v1346_v21, %v1328_v1  ;;  %v1298_v28 = vsel %vm800_vm7, 0.0, %v2694_v43  ;;  %v1226_v37 = vpop.f32.mrb[19].mxu0  ;;  %v1334_v1 = vmul.f32 %v3873_v23, %v1317_v46  ;;  %v1320_v43 = vld [vmem:[%s4884_s2 + $0x48] sm:$0xff]  ;;  %v4024_v46 = vadd.s32 104, %v3861_v59 }
 0x5a9   :  { %v1297_v57 = vsel %vm799_vm8, 0.0, %v1226_v37  ;;  %v1349_v50 = vmul.f32 %v3881_v24, %v1298_v28  ;;  %v3999_v37 = vadd.s32 88, %v3861_v59 }
 0x5aa   :  { %v1348_v0 = vmul.f32 %v3881_v24, %v1297_v57  ;;  %v1378_v10 = vadd.f32 %v3914_v61, %v3916_v44  ;;  %4944 = vst [vmem:[#allocation23_spill] sm:$0xff] %v4024_v46  ;;  %vm4903_vm1 = vcmp.eq.s32.totalorder %v4024_v46, %v3866_v9 }
 0x5ab   :  { %v2697_v34 = vpop.f32.mrb[20].mxu0  ;;  %v3972_v16 = vadd.f32 %v1349_v50, %v1331_v63  ;;  %4943 = vst [vmem:[#allocation22_spill] sm:$0xff] %v3999_v37  ;;  %vm4905_vm15 = vcmp.eq.s32.totalorder %v3999_v37, %v3866_v9 }
 0x5ac   :  { %v3948_v35 = vadd.f32 %v1348_v0, %v1330_v6  ;;  %v1300_v13 = vsel %vm4906_vm9, 0.0, %v2697_v34  ;;  %v1236_v20 = vpop.f32.mrb[21].mxu0  ;;  %v4002_v6 = vadd.s32 80, %v3861_v59  ;;  %v1337_v0 = vmul.f32 %v3873_v23, %v1320_v43 }
 0x5ad   :  { %v1299_v27 = vsel %vm801_vm10, 0.0, %v1236_v20  ;;  %v1351_v31 = vmul.f32 %v3881_v24, %v1300_v13  ;;  %v1336_v34 = vmul.f32 %v3873_v23, %v1319_v40  ;;  %v1322_v20 = vld [vmem:[%s4884_s2 + $0x58] sm:$0xff] }
 0x5ae   :  { %v1379_v30 = vadd.f32 %v1378_v10, %v3948_v35  ;;  %v1350_v17 = vmul.f32 %v3881_v24, %v1299_v27  ;;  %vm4917_vm0 = vcmp.eq.s32.totalorder %v4002_v6, %v3866_v9 }
 0x5af   :  { %v2700_v38 = vpop.f32.mrb[22].mxu0  ;;  %v4004_v8 = vadd.f32 %v1351_v31, %v1333_v41 }
 0x5b0   :  { %v3979_v3 = vadd.f32 %v1350_v17, %v1332_v7  ;;  %v1380_v14 = vadd.f32 %v1379_v30, %v3972_v16  ;;  %v1302_v22 = vsel %vm804_vm11, 0.0, %v2700_v38  ;;  %v1246_v21 = vpop.f32.mrb[23].mxu0  ;;  %v4034_v30 = vadd.s32 96, %v3861_v59 }
 0x5b1   :  { %v1301_v28 = vsel %vm803_vm12, 0.0, %v1246_v21  ;;  %v1353_v57 = vmul.f32 %v3881_v24, %v1302_v22  ;;  %v1339_v22 = vmul.f32 %v3873_v23, %v1322_v20  ;;  %v1338_v21 = vmul.f32 %v3873_v23, %v1321_v51 }
 0x5b2   :  { %v1381_v56 = vadd.f32 %v1380_v14, %v3979_v3  ;;  %v1352_v63 = vmul.f32 %v3881_v24, %v1301_v28  ;;  %4945 = vst [vmem:[#allocation24_spill] sm:$0xff] %v4034_v30  ;;  %vm4904_vm2 = vcmp.eq.s32.totalorder %v4034_v30, %v3866_v9 }
 0x5b3   :  { %v2703_v50 = vpop.f32.mrb[24].mxu0  ;;  %v4036_v31 = vadd.f32 %v1353_v57, %v1335_v42 }
 0x5b4   :  { %v4011_v7 = vadd.f32 %v1352_v63, %v1334_v1  ;;  %v1382_v10 = vadd.f32 %v1381_v56, %v4004_v8  ;;  %v1304_v41 = vsel %vm806_vm13, 0.0, %v2703_v50  ;;  %v1256_v13 = vpop.f32.mrb[25].mxu0  ;;  %v1324_v56 = vld [vmem:[%s4884_s2 + $0x68] sm:$0xff]  ;;  %v1323_v63 = vld [vmem:[%s4884_s2 + $0x60] sm:$0xff]  ;;  %v4063_v50 = vadd.s32 120, %v3861_v59 }
 0x5b5   :  { %v1303_v27 = vsel %vm805_vm14, 0.0, %v1256_v13  ;;  %v1355_v38 = vmul.f32 %v3881_v24, %v1304_v41 }
 0x5b6   :  { %v1383_v17 = vadd.f32 %v1382_v10, %v4011_v7  ;;  %v1354_v1 = vmul.f32 %v3881_v24, %v1303_v27  ;;  %4946 = vst [vmem:[#allocation25_spill] sm:$0xff] %v4063_v50  ;;  %v1341_v27 = vmul.f32 %v3873_v23, %v1324_v56  ;;  %vm4901_vm3 = vcmp.eq.s32.totalorder %v4063_v50, %v3866_v9 }
 0x5b7   :  { %v2706_v14 = vpop.f32.mrb[26].mxu0  ;;  %v4068_v10 = vadd.f32 %v1355_v38, %v1337_v0  ;;  %v1326_v0 = vld [vmem:[%s4884_s2 + $0x78] sm:$0xff]  ;;  %v1325_v38 = vld [vmem:[%s4884_s2 + $0x70] sm:$0xff] }
 0x5b8   :  { %v4043_v43 = vadd.f32 %v1354_v1, %v1336_v34  ;;  %v1384_v40 = vadd.f32 %v1383_v17, %v4036_v31  ;;  %v1306_v42 = vsel %vm4905_vm15, 0.0, %v2706_v14  ;;  %v1266_v28 = vpop.f32.mrb[27].mxu0  ;;  %v4066_v34 = vadd.s32 112, %v3861_v59 }
 0x5b9   :  { %v1305_v57 = vsel %vm4917_vm0, 0.0, %v1266_v28  ;;  %v1357_v13 = vmul.f32 %v3881_v24, %v1306_v42  ;;  %v1340_v28 = vmul.f32 %v3873_v23, %v1323_v63 }
 0x5ba   :  { %4947 = vst [vmem:[#allocation26_spill] sm:$0xff] %v4066_v34  ;;  %v1385_v41 = vadd.f32 %v1384_v40, %v4043_v43  ;;  %v1356_v20 = vmul.f32 %v3881_v24, %v1305_v57  ;;  %vm4902_vm4 = vcmp.eq.s32.totalorder %v4066_v34, %v3866_v9 }
 0x5bb   :  { %v2709_v51 = vpop.f32.mrb[28].mxu0  ;;  %v4093_v56 = vadd.f32 %v1357_v13, %v1339_v22 }
 0x5bc   :  { %v4074_v17 = vadd.f32 %v1356_v20, %v1338_v21  ;;  %v1308_v1 = vsel %vm4903_vm1, 0.0, %v2709_v51  ;;  %v1276_v14 = vpop.f32.mrb[29].mxu0  ;;  %v1386_v40 = vadd.f32 %v1385_v41, %v4068_v10  ;;  %v1343_v41 = vmul.f32 %v3873_v23, %v1326_v0 }
 0x5bd   :  { %v1359_v21 = vmul.f32 %v3881_v24, %v1308_v1  ;;  %v1307_v42 = vsel %vm4904_vm2, 0.0, %v1276_v14  ;;  %v1342_v51 = vmul.f32 %v3873_v23, %v1325_v38  ;;  %v1405_v1 = vmax.f32 %v3916_v44, %v3979_v3 }
 0x5be   :  { %v1358_v57 = vmul.f32 %v3881_v24, %v1307_v42  ;;  %v1387_v63 = vadd.f32 %v1386_v40, %v4074_v17  ;;  %v1406_v14 = vmax.f32 %v3914_v61, %v4004_v8  ;;  %v1407_v38 = vmax.f32 %v3948_v35, %v4011_v7 }
 0x5bf   :  { %v2712_v20 = vpop.f32.mrb[30].mxu0  ;;  %v4105_v22 = vadd.f32 %v1359_v21, %v1341_v27  ;;  %v1408_v27 = vmax.f32 %v3972_v16, %v4036_v31 }
 0x5c0   :  { %v4107_v13 = vadd.f32 %v1358_v57, %v1340_v28  ;;  %v1310_v42 = vsel %vm4901_vm3, 0.0, %v2712_v20  ;;  %v1286_v40 = vpop.f32.mrb[31].mxu0  ;;  %v1388_v33 = vadd.f32 %v1387_v63, %v4093_v56  ;;  %v1409_v57 = vmax.f32 %v1405_v1, %v4043_v43 }
 0x5c1   :  { %4948 = vst [vmem:[#allocation27_spill] sm:$0xff] %v4105_v22  ;;  %v1361_v0 = vmul.f32 %v3881_v24, %v1310_v42  ;;  %v1309_v23 = vsel %vm4902_vm4, 0.0, %v1286_v40  ;;  %v1410_v63 = vmax.f32 %v1406_v14, %v4068_v10  ;;  %v1411_v42 = vmax.f32 %v1407_v38, %v4074_v17 }
 0x5c2   :  { %v1360_v28 = vmul.f32 %v3881_v24, %v1309_v23  ;;  %v1389_v21 = vadd.f32 %v1388_v33, %v4107_v13  ;;  %v1412_v40 = vmax.f32 %v1408_v27, %v4093_v56  ;;  %v1413_v25 = vmax.f32 %v1409_v57, %v4107_v13 }
 0x5c3   :  { %v4125_v20 = vadd.f32 %v1361_v0, %v1343_v41  ;;  %v1414_v24 = vmax.f32 %v1410_v63, %v4105_v22 }
 0x5c4   :  { %v4129_v32 = vadd.f32 %v1360_v28, %v1342_v51  ;;  %v1390_v26 = vadd.f32 %v1389_v21, %v4105_v22 }
 0x5c5   :  { %v1416_v33 = vmax.f32 %v1412_v40, %v4125_v20  ;;  %v1417_v0 = vmax.f32 %v1413_v25, %v1414_v24 }
 0x5c6   :  { %4949 = vst [vmem:[#allocation28_spill] sm:$0xff] %v4129_v32  ;;  %v1391_v1 = vadd.f32 %v1390_v26, %v4129_v32  ;;  %v1415_v14 = vmax.f32 %v1411_v42, %v4129_v32 }
 0x5c8   :  { %v1392_v41 = vadd.f32 %v1391_v1, %v4125_v20  ;;  %v1418_v23 = vmax.f32 %v1415_v14, %v1416_v33 }
 0x5ca   :  { %1393 = vadd.xlane.f32.xlu0 %v1392_v41  ;;  %v1419_v38 = vmax.f32 %v1417_v0, %v1418_v23 }
 0x5cc   :  { %1420 = vmax.xlane.f32.xlu1 %v1419_v38 }
 0x657   :  { %v1394_v51 = vpop.xlane.xlu0 %1393 }
 0x658   :  { %v1395_v27 = vrot.slane %v1394_v51, 4 }
 0x659   :  { %v1421_v28 = vpop.xlane.xlu1 %1420 }
 0x65a   :  { %v1396_v21 = vadd.f32 %v1395_v27, %v1394_v51  ;;  %v1422_v57 = vrot.slane %v1421_v28, 4 }
 0x65c   :  { %v1397_v19 = vrot.slane %v1396_v21, 2  ;;  %v1423_v63 = vmax.f32 %v1421_v28, %v1422_v57 }
 0x65e   :  { %v1424_v18 = vrot.slane %v1423_v63, 2  ;;  %v1398_v40 = vadd.f32 %v1397_v19, %v1396_v21 }
 0x660   :  { %v1399_v12 = vrot.slane %v1398_v40, 1  ;;  %v1425_v26 = vmax.f32 %v1423_v63, %v1424_v18 }
 0x662   :  { %v1400_v11 = vadd.f32 %v1399_v12, %v1398_v40  ;;  %v1426_v42 = vrot.slane %v1425_v26, 1 }
 0x664   :  { %2921 = vpush %v1400_v11  ;;  %v1427_v1 = vmax.f32 %v1425_v26, %v1426_v42 }
 0x666   :  { %2923 = vpush %v1427_v1 }
 0x695   :  { %s2922_s2 = spop %2921 }
 0x696   :  { %s1404_s15 = smul.f32 6.1035156e-05, %s2922_s2 }
 0x697   :  { %s2924_s16 = spop %2923 }
 0x698   :  { %s1429_s17 = ssub.f32 %s2924_s16, %s1404_s15  ;;  %v4138_v25 = vstv %s1404_s15 }
 0x699   :  { %v1437_v12 = vsub.f32 %v3916_v44, %v4138_v25  ;;  %v1443_v11 = vsub.f32 %v4011_v7, %v4138_v25  ;;  %v1438_v18 = vsub.f32 %v3914_v61, %v4138_v25  ;;  %v1444_v19 = vsub.f32 %v4036_v31, %v4138_v25 }
 0x69a   :  { %v1430_v24 = vstv %s1429_s17  ;;  %v1439_v41 = vsub.f32 %v3948_v35, %v4138_v25  ;;  %v1445_v0 = vsub.f32 %v4043_v43, %v4138_v25  ;;  %v4155_v23 = vsub.f32 %v3972_v16, %v4138_v25 }
 0x69b   :  { %3026 = vrcp.f32 %v1430_v24  ;;  %vm1453_vm3 = vcmp.gt.f32.partialorder %v1437_v12, 0.0  ;;  %vm1459_vm4 = vcmp.gt.f32.partialorder %v1443_v11, 0.0  ;;  %vm1454_vm1 = vcmp.gt.f32.partialorder %v1438_v18, 0.0 }
 0x69c   :  { %3028 = vrcp.f32 %v4138_v25  ;;  %vm1460_vm2 = vcmp.gt.f32.partialorder %v1444_v19, 0.0  ;;  %v4159_v38 = vsub.f32 %v4068_v10, %v4138_v25  ;;  %vm1455_vm15 = vcmp.gt.f32.partialorder %v1439_v41, 0.0 }
 0x69d   :  { %vm1461_vm9 = vcmp.gt.f32.partialorder %v1445_v0, 0.0  ;;  %v4163_v51 = vsub.f32 %v3979_v3, %v4138_v25  ;;  %v4167_v27 = vsub.f32 %v4074_v17, %v4138_v25  ;;  %v4171_v28 = vsub.f32 %v4004_v8, %v4138_v25 }
 0x69e   :  { %v4175_v21 = vsub.f32 %v4093_v56, %v4138_v25  ;;  %v4181_v63 = vsub.f32 %v4107_v13, %v4138_v25  ;;  %v4185_v40 = vsub.f32 %v4105_v22, %v4138_v25  ;;  %v4189_v26 = vsub.f32 %v4129_v32, %v4138_v25 }
 0x69f   :  { %vm1456_vm0 = vcmp.gt.f32.partialorder %v4155_v23, 0.0 }
 0x6a5   :  { %v3027_v33 = vpop.eup %3026 }
 0x6a6   :  { %v3029_v14 = vpop.eup %3028  ;;  %2925 = vpush %v3027_v33 }
 0x6a7   :  { %2927 = vpush %v3029_v14 }
 0x6d7   :  { %s2926_s0 = spop %2925 }
 0x6d8   :  { %v4177_v57 = vstv %s2926_s0  ;;  %s2928_s18 = spop %2927 }
 0x6d9   :  { %v4191_v42 = vstv %s2928_s18  ;;  %v1470_v1 = vmul.f32 %v4177_v57, %v1437_v12  ;;  %v1476_v24 = vmul.f32 %v4177_v57, %v1443_v11  ;;  %v1471_v33 = vmul.f32 %v4177_v57, %v1438_v18 }
 0x6da   :  { %v1487_v14 = vmul.f32 %v4191_v42, %v3916_v44  ;;  %v1493_v5 = vmul.f32 %v4191_v42, %v4011_v7  ;;  %v1488_v4 = vmul.f32 %v4191_v42, %v3914_v61  ;;  %v1477_v62 = vmul.f32 %v4177_v57, %v1444_v19 }
 0x6db   :  { %v1494_v60 = vmul.f32 %v4191_v42, %v4036_v31  ;;  %v1472_v55 = vmul.f32 %v4177_v57, %v1439_v41  ;;  %v1489_v53 = vmul.f32 %v4191_v42, %v3948_v35  ;;  %v1478_v49 = vmul.f32 %v4177_v57, %v1445_v0 }
 0x6dc   :  { %v1503_v47 = vsub.f32 0.0, %v1487_v14  ;;  %v1509_v44 = vsub.f32 0.0, %v1493_v5  ;;  %v1504_v50 = vsub.f32 0.0, %v1488_v4  ;;  %v1495_v7 = vmul.f32 %v4191_v42, %v4043_v43 }
 0x6dd   :  { %v1510_v34 = vsub.f32 0.0, %v1494_v60  ;;  %v1505_v61 = vsub.f32 0.0, %v1489_v53  ;;  %v1473_v31 = vmul.f32 %v4177_v57, %v4155_v23  ;;  %v1490_v46 = vmul.f32 %v4191_v42, %v3972_v16 }
 0x6de   :  { %v1519_v35 = vsel %vm1453_vm3, %v1470_v1, %v1503_v47  ;;  %v1525_v30 = vsel %vm1459_vm4, %v1476_v24, %v1509_v44  ;;  %v1520_v5 = vsel %vm1454_vm1, %v1471_v33, %v1504_v50  ;;  %v1511_v4 = vsub.f32 0.0, %v1495_v7 }
 0x6df   :  { %v1535_v14 = vadd.f32 1.0, %v1519_v35  ;;  %v1541_v37 = vadd.f32 1.0, %v1525_v30  ;;  %v1536_v43 = vadd.f32 1.0, %v1520_v5  ;;  %v1526_v53 = vsel %vm1460_vm2, %v1477_v62, %v1510_v34 }
 0x6e0   :  { %v1542_v60 = vadd.f32 1.0, %v1526_v53  ;;  %v1521_v32 = vsel %vm1455_vm15, %v1472_v55, %v1505_v61  ;;  %v1527_v22 = vsel %vm1461_vm9, %v1478_v49, %v1511_v4  ;;  %v1506_v15 = vsub.f32 0.0, %v1490_v46 }
 0x6e1   :  { %v4225_v47 = vsel %vm797_vm6, %v1535_v14, %v1519_v35  ;;  %v4230_v16 = vsel %vm803_vm12, %v1541_v37, %v1525_v30  ;;  %v4235_v62 = vsel %vm798_vm5, %v1536_v43, %v1520_v5  ;;  %v1537_v50 = vadd.f32 1.0, %v1521_v32 }
 0x6e2   :  { %vm1462_vm4 = vcmp.gt.f32.partialorder %v4159_v38, 0.0  ;;  %vm1583_vm9 = vcmp.gt.f32.partialorder %v4225_v47, 0.0  ;;  %v1615_v49 = vmul.f32 %v4225_v47, %v3337_v39  ;;  %vm1589_vm6 = vcmp.gt.f32.partialorder %v4230_v16, 0.0 }
 0x6e3   :  { %v1621_v55 = vmul.f32 %v4230_v16, %v3337_v39  ;;  %vm1584_vm12 = vcmp.gt.f32.partialorder %v4235_v62, 0.0  ;;  %v1616_v59 = vmul.f32 %v4235_v62, %v3337_v39  ;;  %v4250_v2 = vsel %vm804_vm11, %v1542_v60, %v1526_v53 }
 0x6e4   :  { %v4255_v45 = vsel %vm799_vm8, %v1537_v50, %v1521_v32  ;;  %v1647_v37 = vsel %vm1583_vm9, %v4225_v47, %v1615_v49  ;;  %vm1590_vm5 = vcmp.gt.f32.partialorder %v4250_v2, 0.0  ;;  %v1622_v30 = vmul.f32 %v4250_v2, %v3337_v39 }
 0x6e5   :  { %v1653_v46 = vsel %vm1589_vm6, %v4230_v16, %v1621_v55  ;;  %vm1457_vm15 = vcmp.gt.f32.partialorder %v4163_v51, 0.0  ;;  %vm1463_vm1 = vcmp.gt.f32.partialorder %v4167_v27, 0.0  ;;  %2745 = vmatprep.mubr.f32.mxu0 %v1647_v37  ;;  %v1648_v58 = vsel %vm1584_vm12, %v4235_v62, %v1616_v59 }
 0x6e6   :  { %2754 = vmatprep.mubr.f32.mxu1 %v1653_v46  ;;  %vm1585_vm8 = vcmp.gt.f32.partialorder %v4255_v45, 0.0  ;;  %v1617_v32 = vmul.f32 %v4255_v45, %v3337_v39  ;;  %v1543_v29 = vadd.f32 1.0, %v1527_v22  ;;  %2746 = vmatmul.mubr.f32.vlgmr.msra.gmra.mrb[32].mxu0 %v1648_v58  ;;  %v1654_v34 = vsel %vm1590_vm5, %v4250_v2, %v1622_v30  ;;  %v4953_v58 = vld [vmem:[#allocation27_spill] sm:$0xff] }
 0x6e7   :  { %v1522_v12 = vsel %vm1456_vm0, %v1473_v31, %v1506_v15  ;;  %v1496_v11 = vmul.f32 %v4191_v42, %v4068_v10  ;;  %vm1458_vm11 = vcmp.gt.f32.partialorder %v4171_v28, 0.0  ;;  %v4276_v18 = vsub.f32 %v4125_v20, %v4138_v25  ;;  %2755 = vmatmul.mubr.f32.vlgmr.msra.gmra.mrb[32].mxu1 %v1654_v34 }
 0x6e8   :  { %v1649_v19 = vsel %vm1585_vm8, %v4255_v45, %v1617_v32  ;;  %v4282_v41 = vsel %vm805_vm14, %v1543_v29, %v1527_v22  ;;  %v1538_v0 = vadd.f32 1.0, %v1522_v12  ;;  %v1479_v15 = vmul.f32 %v4177_v57, %v4159_v38 }
 0x6e9   :  { %2748 = vmatprep.mubr.f32.mxu0 %v1649_v19  ;;  %vm1591_vm0 = vcmp.gt.f32.partialorder %v4282_v41, 0.0  ;;  %v1623_v10 = vmul.f32 %v4282_v41, %v3337_v39  ;;  %v1512_v25 = vsub.f32 0.0, %v1496_v11  ;;  %v1491_v23 = vmul.f32 %v4191_v42, %v3979_v3 }
 0x6ea   :  { %v4294_v52 = vsel %vm800_vm7, %v1538_v0, %v1522_v12  ;;  %v1474_v22 = vmul.f32 %v4177_v57, %v4163_v51  ;;  %v1480_v1 = vmul.f32 %v4177_v57, %v4167_v27  ;;  %v1497_v24 = vmul.f32 %v4191_v42, %v4074_v17 }
 0x6eb   :  { %vm1464_vm14 = vcmp.gt.f32.partialorder %v4175_v21, 0.0  ;;  %v1655_v33 = vsel %vm1591_vm0, %v4282_v41, %v1623_v10  ;;  %vm1586_vm2 = vcmp.gt.f32.partialorder %v4294_v52, 0.0  ;;  %v1618_v36 = vmul.f32 %v4294_v52, %v3337_v39 }
 0x6ec   :  { %v1528_v3 = vsel %vm1462_vm4, %v1479_v15, %v1512_v25  ;;  %2757 = vmatprep.mubr.f32.mxu1 %v1655_v33  ;;  %v1507_v7 = vsub.f32 0.0, %v1491_v23  ;;  %v1513_v61 = vsub.f32 0.0, %v1497_v24  ;;  %v1492_v31 = vmul.f32 %v4191_v42, %v4004_v8  ;;  %v4954_v25 = vld [vmem:[#allocation28_spill] sm:$0xff] }
 0x6ed   :  { %v1544_v44 = vadd.f32 1.0, %v1528_v3  ;;  %vm1465_vm7 = vcmp.gt.f32.partialorder %v4181_v63, 0.0  ;;  %v1650_v17 = vsel %vm1586_vm2, %v4294_v52, %v1618_v36  ;;  %v1475_v35 = vmul.f32 %v4177_v57, %v4171_v28 }
 0x6ee   :  { %v1481_v5 = vmul.f32 %v4177_v57, %v4175_v21  ;;  %v1498_v38 = vmul.f32 %v4191_v42, %v4093_v56  ;;  %2749 = vmatmul.mubr.f32.gmra.mrb[34].mxu0 %v1650_v17  ;;  %v1523_v8 = vsel %vm1457_vm15, %v1474_v22, %v1507_v7  ;;  %v1529_v14 = vsel %vm1463_vm1, %v1480_v1, %v1513_v61  ;;  %v4955_v22 = vld [vmem:[#allocation22_spill] sm:$0xff] }
 0x6ef   :  { %v4322_v4 = vsel %vm806_vm13, %v1544_v44, %v1528_v3  ;;  %v1508_v43 = vsub.f32 0.0, %v1492_v31  ;;  %vm1466_vm3 = vcmp.gt.f32.partialorder %v4185_v40, 0.0  ;;  %v1539_v53 = vadd.f32 1.0, %v1523_v8  ;;  %v4957_v3 = vld [vmem:[#allocation24_spill] sm:$0xff] }
 0x6f0   :  { %vm1592_vm4 = vcmp.gt.f32.partialorder %v4322_v4, 0.0  ;;  %v1624_v56 = vmul.f32 %v4322_v4, %v3337_v39  ;;  %v1545_v60 = vadd.f32 1.0, %v1529_v14  ;;  %v1514_v50 = vsub.f32 0.0, %v1498_v38 }
 0x6f1   :  { %v1524_v48 = vsel %vm1458_vm11, %v1475_v35, %v1508_v43  ;;  %v1482_v51 = vmul.f32 %v4177_v57, %v4181_v63  ;;  %v1499_v27 = vmul.f32 %v4191_v42, %v4107_v13  ;;  %v4342_v55 = vsel %vm801_vm10, %v1539_v53, %v1523_v8 }
 0x6f2   :  { %v1656_v49 = vsel %vm1592_vm4, %v4322_v4, %v1624_v56  ;;  %vm4950_vm13 = vcmp.eq.s32.totalorder %v4002_v6, %v3866_v9  ;;  %v1540_v28 = vadd.f32 1.0, %v1524_v48  ;;  %vm1587_vm9 = vcmp.gt.f32.partialorder %v4342_v55, 0.0 }
 0x6f3   :  { %v4347_v59 = vsel %vm4950_vm13, %v1545_v60, %v1529_v14  ;;  %2758 = vmatmul.mubr.f32.gmra.mrb[34].mxu1 %v1656_v49  ;;  %v1619_v37 = vmul.f32 %v4342_v55, %v3337_v39  ;;  %vm1467_vm10 = vcmp.gt.f32.partialorder %v4189_v26, 0.0  ;;  %vm4952_vm12 = vcmp.eq.s32.totalorder %v4951_v54, %v3866_v9 }
 0x6f4   :  { %vm1593_vm6 = vcmp.gt.f32.partialorder %v4347_v59, 0.0  ;;  %v1625_v13 = vmul.f32 %v4347_v59, %v3337_v39  ;;  %v4359_v6 = vsel %vm4952_vm12, %v1540_v28, %v1524_v48  ;;  %v1530_v46 = vsel %vm1464_vm14, %v1481_v5, %v1514_v50 }
 0x6f5   :  { %v1515_v30 = vsub.f32 0.0, %v1499_v27  ;;  %v1500_v32 = vmul.f32 %v4191_v42, %v4953_v58  ;;  %v1651_v29 = vsel %vm1587_vm9, %v4342_v55, %v1619_v37  ;;  %vm1588_vm5 = vcmp.gt.f32.partialorder %v4359_v6, 0.0 }
 0x6f6   :  { %v1657_v34 = vsel %vm1593_vm6, %v4347_v59, %v1625_v13  ;;  %v1620_v12 = vmul.f32 %v4359_v6, %v3337_v39  ;;  %2751 = vmatprep.mubr.f32.mxu0 %v1651_v29  ;;  %v1546_v11 = vadd.f32 1.0, %v1530_v46  ;;  %v1483_v19 = vmul.f32 %v4177_v57, %v4185_v40 }
 0x6f7   :  { %2760 = vmatprep.mubr.f32.mxu1 %v1657_v34  ;;  %v1531_v21 = vsel %vm1465_vm7, %v1482_v51, %v1515_v30  ;;  %v1516_v0 = vsub.f32 0.0, %v1500_v32  ;;  %v1501_v23 = vmul.f32 %v4191_v42, %v4954_v25  ;;  %vm1468_vm15 = vcmp.gt.f32.partialorder %v4276_v18, 0.0 }
 0x6f8   :  { %v1652_v15 = vsel %vm1588_vm5, %v4359_v6, %v1620_v12  ;;  %v1547_v10 = vadd.f32 1.0, %v1531_v21  ;;  %vm4956_vm1 = vcmp.eq.s32.totalorder %v4955_v22, %v3866_v9  ;;  %v1484_v24 = vmul.f32 %v4177_v57, %v4189_v26 }
 0x6f9   :  { %2752 = vmatmul.mubr.f32.gmra.mrb[36].mxu0 %v1652_v15  ;;  %v4381_v1 = vsel %vm4956_vm1, %v1546_v11, %v1530_v46  ;;  %v1532_v63 = vsel %vm1466_vm3, %v1483_v19, %v1516_v0  ;;  %v1502_v33 = vmul.f32 %v4191_v42, %v4125_v20  ;;  %vm4958_vm11 = vcmp.eq.s32.totalorder %v4957_v3, %v3866_v9  ;;  %v4959_v42 = vld [vmem:[#allocation23_spill] sm:$0xff] }
 0x6fa   :  { %vm1594_vm8 = vcmp.gt.f32.partialorder %v4381_v1, 0.0  ;;  %v1626_v36 = vmul.f32 %v4381_v1, %v3337_v39  ;;  %v4395_v44 = vsel %vm4958_vm11, %v1547_v10, %v1531_v21  ;;  %v1548_v7 = vadd.f32 1.0, %v1532_v63 }
 0x6fb   :  { %vm1595_vm0 = vcmp.gt.f32.partialorder %v4395_v44, 0.0  ;;  %v1627_v40 = vmul.f32 %v4395_v44, %v3337_v39  ;;  %v1517_v61 = vsub.f32 0.0, %v1501_v23  ;;  %v1518_v31 = vsub.f32 0.0, %v1502_v33 }
 0x6fc   :  { %v1658_v20 = vsel %vm1594_vm8, %v4381_v1, %v1626_v36  ;;  %vm4960_vm14 = vcmp.eq.s32.totalorder %v4959_v42, %v3866_v9  ;;  %v1485_v35 = vmul.f32 %v4177_v57, %v4276_v18  ;;  %v1567_v5 = vsub.f32 0.0, %v4225_v47  ;;  %v4961_v47 = vld [vmem:[#allocation26_spill] sm:$0xff]  ;;  %v4963_v18 = vld [vmem:[#allocation25_spill] sm:$0xff] }
 0x6fd   :  { %v4404_v17 = vsel %vm4960_vm14, %v1548_v7, %v1532_v63  ;;  %2761 = vmatmul.mubr.f32.gmra.mrb[36].mxu1 %v1658_v20  ;;  %v1659_v38 = vsel %vm1595_vm0, %v4395_v44, %v1627_v40  ;;  %v1533_v14 = vsel %vm1467_vm10, %v1484_v24, %v1517_v61  ;;  %vm4962_vm7 = vcmp.eq.s32.totalorder %v4961_v47, %v3866_v9 }
 0x6fe   :  { %vm1596_vm2 = vcmp.gt.f32.partialorder %v4404_v17, 0.0  ;;  %v1628_v8 = vmul.f32 %v4404_v17, %v3337_v39  ;;  %2763 = vmatprep.mubr.f32.mxu1 %v1659_v38  ;;  %v1549_v43 = vadd.f32 1.0, %v1533_v14  ;;  %v1534_v56 = vsel %vm1468_vm15, %v1485_v35, %v1518_v31 }
 0x6ff   :  { %v1550_v53 = vadd.f32 1.0, %v1534_v56  ;;  %v1631_v48 = vmul.f32 %v1567_v5, %v3337_v39  ;;  %v1568_v50 = vsub.f32 0.0, %v4235_v62  ;;  %vm4964_vm4 = vcmp.eq.s32.totalorder %v4963_v18, %v3866_v9 }
 0x700   :  { %v1660_v57 = vsel %vm1596_vm2, %v4404_v17, %v1628_v8  ;;  %v4421_v60 = vsel %vm4962_vm7, %v1549_v43, %v1533_v14  ;;  %v1569_v27 = vsub.f32 0.0, %v4255_v45  ;;  %vm1599_vm9 = vcmp.gt.f32.partialorder %v1567_v5, 0.0 }
 0x701   :  { %2764 = vmatmul.mubr.f32.gmra.mrb[38].mxu1 %v1660_v57  ;;  %vm1597_vm3 = vcmp.gt.f32.partialorder %v4421_v60, 0.0  ;;  %v1629_v26 = vmul.f32 %v4421_v60, %v3337_v39  ;;  %v4431_v51 = vsel %vm4964_vm4, %v1550_v53, %v1534_v56  ;;  %v1632_v37 = vmul.f32 %v1568_v50, %v3337_v39 }
 0x702   :  { %vm1598_vm13 = vcmp.gt.f32.partialorder %v4431_v51, 0.0  ;;  %v1630_v49 = vmul.f32 %v4431_v51, %v3337_v39  ;;  %v1570_v13 = vsub.f32 0.0, %v4294_v52  ;;  %v1663_v9 = vsel %vm1599_vm9, %v1567_v5, %v1631_v48 }
 0x703   :  { %v1661_v62 = vsel %vm1597_vm3, %v4421_v60, %v1629_v26  ;;  %vm1600_vm6 = vcmp.gt.f32.partialorder %v1568_v50, 0.0  ;;  %v1633_v45 = vmul.f32 %v1569_v27, %v3337_v39  ;;  %v1571_v54 = vsub.f32 0.0, %v4342_v55 }
 0x704   :  { %2766 = vmatprep.mubr.f32.mxu1 %v1661_v62  ;;  %v1662_v28 = vsel %vm1598_vm13, %v4431_v51, %v1630_v49  ;;  %vm1601_vm10 = vcmp.gt.f32.partialorder %v1569_v27, 0.0  ;;  %v1664_v46 = vsel %vm1600_vm6, %v1568_v50, %v1632_v37  ;;  %v1634_v30 = vmul.f32 %v1570_v13, %v3337_v39 }
 0x705   :  { %2767 = vmatmul.mubr.f32.gmra.mrb[40].mxu1 %v1662_v28  ;;  %v1572_v58 = vsub.f32 0.0, %v4359_v6  ;;  %v1665_v32 = vsel %vm1601_vm10, %v1569_v27, %v1633_v45  ;;  %vm1602_vm12 = vcmp.gt.f32.partialorder %v1570_v13, 0.0  ;;  %v1635_v29 = vmul.f32 %v1571_v54, %v3337_v39 }
 0x706   :  { %2769 = vmatprep.mubr.f32.mxu1 %v1663_v9  ;;  %v1573_v52 = vsub.f32 0.0, %v4230_v16  ;;  %vm1603_vm5 = vcmp.gt.f32.partialorder %v1571_v54, 0.0  ;;  %v1666_v34 = vsel %vm1602_vm12, %v1570_v13, %v1634_v30  ;;  %v1574_v55 = vsub.f32 0.0, %v4250_v2 }
 0x707   :  { %v1636_v12 = vmul.f32 %v1572_v58, %v3337_v39  ;;  %v1667_v11 = vsel %vm1603_vm5, %v1571_v54, %v1635_v29  ;;  %vm1604_vm15 = vcmp.gt.f32.partialorder %v1572_v58, 0.0  ;;  %v1575_v6 = vsub.f32 0.0, %v4282_v41 }
 0x708   :  { %v1637_v21 = vmul.f32 %v1573_v52, %v3337_v39  ;;  %vm1605_vm1 = vcmp.gt.f32.partialorder %v1573_v52, 0.0  ;;  %v1638_v0 = vmul.f32 %v1574_v55, %v3337_v39  ;;  %v1576_v16 = vsub.f32 0.0, %v4322_v4 }
 0x709   :  { %2770 = vmatmul.mubr.f32.gmra.mrb[42].mxu1 %v1664_v46  ;;  %v1668_v19 = vsel %vm1604_vm15, %v1572_v58, %v1636_v12  ;;  %vm1606_vm8 = vcmp.gt.f32.partialorder %v1574_v55, 0.0  ;;  %v1639_v10 = vmul.f32 %v1575_v6, %v3337_v39  ;;  %v1577_v2 = vsub.f32 0.0, %v4347_v59 }
 0x70a   :  { %2772 = vmatprep.mubr.f32.mxu1 %v1665_v32  ;;  %v1669_v15 = vsel %vm1605_vm1, %v1573_v52, %v1637_v21  ;;  %vm1607_vm11 = vcmp.gt.f32.partialorder %v1575_v6, 0.0  ;;  %v1670_v25 = vsel %vm1606_vm8, %v1574_v55, %v1638_v0  ;;  %v1640_v23 = vmul.f32 %v1576_v16, %v3337_v39 }
 0x70b   :  { %v1578_v41 = vsub.f32 0.0, %v4381_v1  ;;  %v1671_v22 = vsel %vm1607_vm11, %v1575_v6, %v1639_v10  ;;  %vm1608_vm0 = vcmp.gt.f32.partialorder %v1576_v16, 0.0  ;;  %v1641_v63 = vmul.f32 %v1577_v2, %v3337_v39 }
 0x70c   :  { %v1579_v4 = vsub.f32 0.0, %v4395_v44  ;;  %vm1609_vm14 = vcmp.gt.f32.partialorder %v1577_v2, 0.0  ;;  %v1672_v24 = vsel %vm1608_vm0, %v1576_v16, %v1640_v23  ;;  %v1580_v59 = vsub.f32 0.0, %v4404_v17 }
 0x70d   :  { %2773 = vmatmul.mubr.f32.gmra.mrb[44].mxu1 %v1666_v34  ;;  %v1642_v33 = vmul.f32 %v1578_v41, %v3337_v39  ;;  %v1673_v36 = vsel %vm1609_vm14, %v1577_v2, %v1641_v63  ;;  %vm1610_vm2 = vcmp.gt.f32.partialorder %v1578_v41, 0.0  ;;  %v1581_v1 = vsub.f32 0.0, %v4421_v60 }
 0x70e   :  { %2775 = vmatprep.mubr.f32.mxu1 %v1667_v11  ;;  %v1643_v3 = vmul.f32 %v1579_v4, %v3337_v39  ;;  %vm1611_vm7 = vcmp.gt.f32.partialorder %v1579_v4, 0.0  ;;  %v1644_v40 = vmul.f32 %v1580_v59, %v3337_v39  ;;  %v1582_v44 = vsub.f32 0.0, %v4431_v51 }
 0x70f   :  { %v1674_v7 = vsel %vm1610_vm2, %v1578_v41, %v1642_v33  ;;  %vm1612_vm3 = vcmp.gt.f32.partialorder %v1580_v59, 0.0  ;;  %v1645_v31 = vmul.f32 %v1581_v1, %v3337_v39  ;;  %vm1613_vm4 = vcmp.gt.f32.partialorder %v1581_v1, 0.0 }
 0x710   :  { %v1675_v61 = vsel %vm1611_vm7, %v1579_v4, %v1643_v3  ;;  %v1676_v20 = vsel %vm1612_vm3, %v1580_v59, %v1644_v40  ;;  %v1646_v42 = vmul.f32 %v1582_v44, %v3337_v39  ;;  %vm1614_vm13 = vcmp.gt.f32.partialorder %v1582_v44, 0.0 }
 0x711   :  { %2776 = vmatmul.mubr.f32.gmra.mrb[46].mxu1 %v1668_v19  ;;  %v1677_v17 = vsel %vm1613_vm4, %v1581_v1, %v1645_v31  ;;  %vm4965_vm9 = vcmask 130048  }
 0x712   :  { %2778 = vmatprep.mubr.f32.mxu1 %v1669_v15  ;;  %v1678_v35 = vsel %vm1614_vm13, %v1582_v44, %v1646_v42  ;;  %vm4966_vm6 = vmmov %vm4965_vm9 }
 0x713   :  { %vm4967_vm10 = vmmov %vm4966_vm6 }
 0x714   :  { %vm4968_vm12 = vmmov %vm4966_vm6 }
 0x715   :  { %2779 = vmatmul.mubr.f32.gmra.mrb[48].mxu1 %v1670_v25  ;;  %vm4969_vm5 = vmmov %vm4966_vm6 }
 0x716   :  { %2781 = vmatprep.mubr.f32.mxu1 %v1671_v22  ;;  %vm4970_vm15 = vmmov %vm4969_vm5 }
 0x717   :  { %vm4971_vm1 = vmmov %vm4969_vm5 }
 0x718   :  { %vm4972_vm8 = vmmov %vm4971_vm1 }
 0x719   :  { %2782 = vmatmul.mubr.f32.gmra.mrb[50].mxu1 %v1672_v24  ;;  %vm4973_vm11 = vmmov %vm4971_vm1 }
 0x71a   :  { %2784 = vmatprep.mubr.f32.mxu1 %v1673_v36  ;;  %vm4974_vm0 = vmmov %vm4971_vm1 }
 0x71b   :  { %vm4975_vm14 = vmmov %vm4974_vm0 }
 0x71c   :  { %vm4976_vm2 = vmmov %vm4974_vm0 }
 0x71d   :  { %2785 = vmatmul.mubr.f32.gmra.mrb[52].mxu1 %v1674_v7  ;;  %vm4977_vm7 = vmmov %vm4974_vm0 }
 0x71e   :  { %2787 = vmatprep.mubr.f32.mxu1 %v1675_v61  ;;  %vm4978_vm3 = vmmov %vm4974_vm0 }
 0x71f   :  { %vm4979_vm4 = vmmov %vm4974_vm0 }
 0x720   :  { %vm4980_vm13 = vmmov %vm4974_vm0 }
 0x721   :  { %2788 = vmatmul.mubr.f32.gmra.mrb[54].mxu1 %v1676_v20 }
 0x722   :  { %2790 = vmatprep.mubr.f32.mxu1 %v1677_v17 }
 0x725   :  { %2791 = vmatmul.mubr.f32.gmra.mrb[56].mxu1 %v1678_v35 }
 0x7b9   :  { %v4467_v5 = vpop.f32.mrb[32].mxu0 }
 0x7ba   :  { %v4469_v38 = vpop.f32.mrb[32].mxu1  ;;  %v4471_v8 = vpop.f32.mrb[33].mxu0  ;;  %v1907_v14 = vsel %vm4965_vm9, %v4467_v5, -inf  ;;  %vm4981_vm9 = vmmov %vm4974_vm0 }
 0x7bb   :  { %v4475_v43 = vpop.f32.mrb[33].mxu1  ;;  %1908 = vmax.xlane.f32.xlu1 %v1907_v14  ;;  %v1904_v39 = vsel %vm4966_vm6, %v4471_v8, -inf  ;;  %v1925_v56 = vsel %vm4967_vm10, %v4469_v38, -inf  ;;  %vm4982_vm6 = vmmov %vm4974_vm0 }
 0x7bc   :  { %1905 = vmax.xlane.f32.xlu0 %v1904_v39  ;;  %v1922_v53 = vsel %vm4968_vm12, %v4475_v43, -inf  ;;  %vm4983_vm10 = vmmov %vm4974_vm0 }
 0x7bd   :  { %vm4984_vm12 = vmmov %vm4974_vm0 }
 0x7bf   :  { %1926 = vmax.xlane.f32.xlu1 %v1925_v56 }
 0x7c0   :  { %1923 = vmax.xlane.f32.xlu0 %v1922_v53 }
 0x7c1   :  { %v4483_v57 = vpop.f32.mrb[34].mxu0 }
 0x7c2   :  { %v4485_v47 = vpop.f32.mrb[35].mxu0  ;;  %v1913_v60 = vsel %vm4969_vm5, %v4483_v57, -inf  ;;  %vm4985_vm5 = vmmov %vm4974_vm0 }
 0x7c3   :  { %1914 = vmax.xlane.f32.xlu1 %v1913_v60  ;;  %v1910_v48 = vsel %vm4970_vm15, %v4485_v47, -inf  ;;  %vm4986_vm15 = vmmov %vm4974_vm0 }
 0x7c4   :  { %1911 = vmax.xlane.f32.xlu0 %v1910_v48 }
 0x7c6   :  { %v4491_v50 = vpop.f32.mrb[34].mxu1 }
 0x7c7   :  { %v4493_v26 = vpop.f32.mrb[35].mxu1  ;;  %v1931_v18 = vsel %vm4971_vm1, %v4491_v50, -inf  ;;  %vm4987_vm1 = vmmov %vm4974_vm0 }
 0x7c8   :  { %1932 = vmax.xlane.f32.xlu1 %v1931_v18  ;;  %v1928_v51 = vsel %vm4972_vm8, %v4493_v26, -inf  ;;  %vm4988_vm8 = vmmov %vm4974_vm0 }
 0x7c9   :  { %1929 = vmax.xlane.f32.xlu0 %v1928_v51 }
 0x7cc   :  { %v4499_v27 = vpop.f32.mrb[36].mxu0 }
 0x7cd   :  { %v4501_v49 = vpop.f32.mrb[37].mxu0  ;;  %v1919_v62 = vsel %vm4973_vm11, %v4499_v27, -inf  ;;  %vm4989_vm11 = vmmov %vm4974_vm0 }
 0x7ce   :  { %1920 = vmax.xlane.f32.xlu1 %v1919_v62  ;;  %v1916_v28 = vsel %vm4974_vm0, %v4501_v49, -inf }
 0x7cf   :  { %1917 = vmax.xlane.f32.xlu0 %v1916_v28 }
 0x7d0   :  { %v4507_v37 = vpop.f32.mrb[36].mxu1 }
 0x7d1   :  { %v4509_v13 = vpop.f32.mrb[37].mxu1  ;;  %v1937_v9 = vsel %vm4975_vm14, %v4507_v37, -inf  ;;  %vm4990_vm14 = vmmov %vm4974_vm0 }
 0x7d2   :  { %1938 = vmax.xlane.f32.xlu1 %v1937_v9  ;;  %v1934_v45 = vsel %vm4976_vm2, %v4509_v13, -inf  ;;  %vm4991_vm2 = vmmov %vm4974_vm0 }
 0x7d3   :  { %1935 = vmax.xlane.f32.xlu0 %v1934_v45 }
 0x7d4   :  { %v4515_v54 = vpop.f32.mrb[38].mxu1 }
 0x7d5   :  { %v4517_v46 = vpop.f32.mrb[39].mxu1  ;;  %v1943_v30 = vsel %vm4977_vm7, %v4515_v54, -inf  ;;  %vm4992_vm7 = vmmov %vm4974_vm0 }
 0x7d6   :  { %1944 = vmax.xlane.f32.xlu1 %v1943_v30  ;;  %v1940_v58 = vsel %vm4978_vm3, %v4517_v46, -inf  ;;  %vm4993_vm3 = vmmov %vm4974_vm0 }
 0x7d7   :  { %1941 = vmax.xlane.f32.xlu0 %v1940_v58 }
 0x7d8   :  { %v4523_v32 = vpop.f32.mrb[40].mxu1 }
 0x7d9   :  { %v4525_v29 = vpop.f32.mrb[41].mxu1  ;;  %v1949_v52 = vsel %vm4979_vm4, %v4523_v32, -inf  ;;  %vm4994_vm4 = vmmov %vm4974_vm0 }
 0x7da   :  { %1950 = vmax.xlane.f32.xlu1 %v1949_v52  ;;  %v1946_v34 = vsel %vm4980_vm13, %v4525_v29, -inf  ;;  %vm4995_vm13 = vmmov %vm4974_vm0 }
 0x7db   :  { %1947 = vmax.xlane.f32.xlu0 %v1946_v34 }
 0x7dc   :  { %v4531_v12 = vpop.f32.mrb[42].mxu1 }
 0x7dd   :  { %v4533_v55 = vpop.f32.mrb[43].mxu1  ;;  %v1955_v11 = vsel %vm4981_vm9, %v4531_v12, -inf  ;;  %vm4996_vm9 = vmmov %vm4974_vm0 }
 0x7de   :  { %1956 = vmax.xlane.f32.xlu1 %v1955_v11  ;;  %v1952_v21 = vsel %vm4982_vm6, %v4533_v55, -inf  ;;  %vm4997_vm6 = vmmov %vm4974_vm0 }
 0x7df   :  { %1953 = vmax.xlane.f32.xlu0 %v1952_v21 }
 0x7e0   :  { %v4539_v6 = vpop.f32.mrb[44].mxu1 }
 0x7e1   :  { %v4541_v19 = vpop.f32.mrb[45].mxu1  ;;  %v1961_v0 = vsel %vm4983_vm10, %v4539_v6, -inf  ;;  %vm4998_vm10 = vmmov %vm4974_vm0 }
 0x7e2   :  { %1962 = vmax.xlane.f32.xlu1 %v1961_v0  ;;  %v1958_v16 = vsel %vm4984_vm12, %v4541_v19, -inf  ;;  %vm4999_vm12 = vmmov %vm4974_vm0 }
 0x7e3   :  { %1959 = vmax.xlane.f32.xlu0 %v1958_v16 }
 0x7e4   :  { %v4547_v15 = vpop.f32.mrb[46].mxu1 }
 0x7e5   :  { %v4549_v10 = vpop.f32.mrb[47].mxu1  ;;  %v1967_v2 = vsel %vm4985_vm5, %v4547_v15, -inf  ;;  %vm5000_vm5 = vmmov %vm4974_vm0 }
 0x7e6   :  { %1968 = vmax.xlane.f32.xlu1 %v1967_v2  ;;  %v1964_v25 = vsel %vm4986_vm15, %v4549_v10, -inf  ;;  %vm5001_vm15 = vmmov %vm4974_vm0 }
 0x7e7   :  { %1965 = vmax.xlane.f32.xlu0 %v1964_v25 }
 0x7e8   :  { %v4555_v23 = vpop.f32.mrb[48].mxu1 }
 0x7e9   :  { %v4557_v41 = vpop.f32.mrb[49].mxu1  ;;  %v1973_v22 = vsel %vm4987_vm1, %v4555_v23, -inf  ;;  %vm5002_vm1 = vmmov %vm4974_vm0 }
 0x7ea   :  { %1974 = vmax.xlane.f32.xlu1 %v1973_v22  ;;  %v1970_v63 = vsel %vm4988_vm8, %v4557_v41, -inf  ;;  %vm5003_vm8 = vmmov %vm4974_vm0 }
 0x7eb   :  { %1971 = vmax.xlane.f32.xlu0 %v1970_v63 }
 0x7ec   :  { %v4563_v4 = vpop.f32.mrb[50].mxu1 }
 0x7ed   :  { %v4565_v24 = vpop.f32.mrb[51].mxu1  ;;  %v1979_v33 = vsel %vm4989_vm11, %v4563_v4, -inf  ;;  %vm5004_vm11 = vmmov %vm4974_vm0 }
 0x7ee   :  { %1980 = vmax.xlane.f32.xlu1 %v1979_v33  ;;  %v1976_v59 = vsel %vm4974_vm0, %v4565_v24, -inf }
 0x7ef   :  { %1977 = vmax.xlane.f32.xlu0 %v1976_v59 }
 0x7f0   :  { %v4571_v36 = vpop.f32.mrb[52].mxu1 }
 0x7f1   :  { %v4573_v3 = vpop.f32.mrb[53].mxu1  ;;  %v1985_v1 = vsel %vm4990_vm14, %v4571_v36, -inf  ;;  %vm5005_vm14 = vmmov %vm4974_vm0 }
 0x7f2   :  { %1986 = vmax.xlane.f32.xlu1 %v1985_v1  ;;  %v1982_v7 = vsel %vm4991_vm2, %v4573_v3, -inf  ;;  %vm5006_vm2 = vmmov %vm4974_vm0 }
 0x7f3   :  { %1983 = vmax.xlane.f32.xlu0 %v1982_v7 }
 0x7f4   :  { %v4579_v40 = vpop.f32.mrb[54].mxu1 }
 0x7f5   :  { %v4581_v44 = vpop.f32.mrb[55].mxu1  ;;  %v1991_v61 = vsel %vm4992_vm7, %v4579_v40, -inf  ;;  %vm5007_vm7 = vmmov %vm4974_vm0 }
 0x7f6   :  { %1992 = vmax.xlane.f32.xlu1 %v1991_v61  ;;  %v1988_v31 = vsel %vm4993_vm3, %v4581_v44, -inf  ;;  %vm5008_vm3 = vmmov %vm4974_vm0 }
 0x7f7   :  { %1989 = vmax.xlane.f32.xlu0 %v1988_v31 }
 0x7f8   :  { %v4587_v20 = vpop.f32.mrb[56].mxu1 }
 0x7f9   :  { %v4589_v42 = vpop.f32.mrb[57].mxu1  ;;  %v1997_v17 = vsel %vm4994_vm4, %v4587_v20, -inf  ;;  %vm5009_vm4 = vmmov %vm4974_vm0 }
 0x7fa   :  { %1998 = vmax.xlane.f32.xlu1 %v1997_v17  ;;  %v1994_v35 = vsel %vm4995_vm13, %v4589_v42, -inf  ;;  %vm5010_vm13 = vmmov %vm4974_vm0 }
 0x7fb   :  { %1995 = vmax.xlane.f32.xlu0 %v1994_v35 }
 0x848   :  { %v1909_v14 = vpop.xlane.xlu1 %1908 }
 0x849   :  { %v2001_v39 = vsub.f32 %v4467_v5, %v1909_v14  ;;  %v1906_v56 = vpop.xlane.xlu0 %1905 }
 0x84a   :  { %v2000_v53 = vsub.f32 %v4471_v8, %v1906_v56 }
 0x84b   :  { %v2034_v60 = vmul.f32 1.442695, %v2001_v39 }
 0x84c   :  { %v2032_v48 = vmul.f32 1.442695, %v2000_v53  ;;  %v1927_v18 = vpop.xlane.xlu1 %1926 }
 0x84d   :  { %3030 = vpow2.f32 %v2034_v60  ;;  %v2007_v51 = vsub.f32 %v4469_v38, %v1927_v18  ;;  %v1924_v62 = vpop.xlane.xlu0 %1923 }
 0x84e   :  { %3032 = vpow2.f32 %v2032_v48  ;;  %v2006_v28 = vsub.f32 %v4475_v43, %v1924_v62 }
 0x84f   :  { %v2046_v9 = vmul.f32 1.442695, %v2007_v51 }
 0x850   :  { %v2044_v45 = vmul.f32 1.442695, %v2006_v28  ;;  %v1915_v30 = vpop.xlane.xlu1 %1914 }
 0x851   :  { %3034 = vpow2.f32 %v2046_v9  ;;  %v2003_v58 = vsub.f32 %v4483_v57, %v1915_v30  ;;  %v1912_v5 = vpop.xlane.xlu0 %1911 }
 0x852   :  { %3036 = vpow2.f32 %v2044_v45  ;;  %v2002_v8 = vsub.f32 %v4485_v47, %v1912_v5 }
 0x853   :  { %v2038_v52 = vmul.f32 1.442695, %v2003_v58 }
 0x854   :  { %v2036_v34 = vmul.f32 1.442695, %v2002_v8 }
 0x855   :  { %v1933_v11 = vpop.xlane.xlu1 %1932  ;;  %3038 = vpow2.f32 %v2038_v52 }
 0x856   :  { %v2009_v38 = vsub.f32 %v4491_v50, %v1933_v11  ;;  %v1930_v21 = vpop.xlane.xlu0 %1929  ;;  %3040 = vpow2.f32 %v2036_v34 }
 0x857   :  { %v2008_v43 = vsub.f32 %v4493_v26, %v1930_v21  ;;  %v4603_v0 = vpop.eup %3030 }
 0x858   :  { %v2050_v16 = vmul.f32 1.442695, %v2009_v38  ;;  %v4605_v2 = vpop.eup %3032  ;;  %v2099_v47 = vsel %vm4996_vm9, %v4603_v0, 0.0  ;;  %vm5011_vm9 = vmmov %vm4974_vm0 }
 0x859   :  { %v2048_v57 = vmul.f32 1.442695, %v2008_v43  ;;  %2100 = vadd.xlane.f32.xlu1 %v2099_v47  ;;  %v2096_v50 = vsel %vm4997_vm6, %v4605_v2, 0.0  ;;  %vm5012_vm6 = vmmov %vm4974_vm0 }
 0x85a   :  { %3042 = vpow2.f32 %v2050_v16  ;;  %2097 = vadd.xlane.f32.xlu0 %v2096_v50 }
 0x85b   :  { %v1921_v25 = vpop.xlane.xlu1 %1920  ;;  %3044 = vpow2.f32 %v2048_v57  ;;  %v4613_v33 = vpop.eup %3034 }
 0x85c   :  { %v2005_v22 = vsub.f32 %v4499_v27, %v1921_v25  ;;  %v1918_v63 = vpop.xlane.xlu0 %1917  ;;  %v4615_v1 = vpop.eup %3036  ;;  %v2117_v31 = vsel %vm4998_vm10, %v4613_v33, 0.0  ;;  %vm5013_vm10 = vmmov %vm4974_vm0 }
 0x85d   :  { %v2004_v26 = vsub.f32 %v4501_v49, %v1918_v63  ;;  %2118 = vadd.xlane.f32.xlu1 %v2117_v31  ;;  %v2114_v35 = vsel %vm4999_vm12, %v4615_v1, 0.0  ;;  %vm5014_vm12 = vmmov %vm4974_vm0 }
 0x85e   :  { %v2042_v59 = vmul.f32 1.442695, %v2005_v22  ;;  %2115 = vadd.xlane.f32.xlu0 %v2114_v35 }
 0x85f   :  { %v2040_v7 = vmul.f32 1.442695, %v2004_v26  ;;  %v1939_v61 = vpop.xlane.xlu1 %1938  ;;  %v4623_v14 = vpop.eup %3038 }
 0x860   :  { %3046 = vpow2.f32 %v2042_v59  ;;  %v2011_v27 = vsub.f32 %v4507_v37, %v1939_v61  ;;  %v1936_v17 = vpop.xlane.xlu0 %1935  ;;  %v4625_v56 = vpop.eup %3040  ;;  %v2105_v48 = vsel %vm5000_vm5, %v4623_v14, 0.0  ;;  %vm5015_vm5 = vmmov %vm4974_vm0 }
 0x861   :  { %3048 = vpow2.f32 %v2040_v7  ;;  %v2010_v49 = vsub.f32 %v4509_v13, %v1936_v17  ;;  %2106 = vadd.xlane.f32.xlu1 %v2105_v48  ;;  %v2102_v51 = vsel %vm5001_vm15, %v4625_v56, 0.0  ;;  %vm5016_vm15 = vmmov %vm4974_vm0 }
 0x862   :  { %v2054_v39 = vmul.f32 1.442695, %v2011_v27  ;;  %2103 = vadd.xlane.f32.xlu0 %v2102_v51 }
 0x863   :  { %v2052_v53 = vmul.f32 1.442695, %v2010_v49  ;;  %v1945_v60 = vpop.xlane.xlu1 %1944 }
 0x864   :  { %3050 = vpow2.f32 %v2054_v39  ;;  %v2013_v37 = vsub.f32 %v4515_v54, %v1945_v60  ;;  %v1942_v18 = vpop.xlane.xlu0 %1941  ;;  %v4633_v62 = vpop.eup %3042 }
 0x865   :  { %3052 = vpow2.f32 %v2052_v53  ;;  %v2012_v13 = vsub.f32 %v4517_v46, %v1942_v18  ;;  %v4635_v9 = vpop.eup %3044  ;;  %v2123_v58 = vsel %vm5002_vm1, %v4633_v62, 0.0  ;;  %vm5017_vm1 = vmmov %vm4974_vm0 }
 0x866   :  { %v2058_v28 = vmul.f32 1.442695, %v2013_v37  ;;  %2124 = vadd.xlane.f32.xlu1 %v2123_v58  ;;  %v2120_v8 = vsel %vm5003_vm8, %v4635_v9, 0.0  ;;  %vm5018_vm8 = vmmov %vm4974_vm0 }
 0x867   :  { %v2056_v45 = vmul.f32 1.442695, %v2012_v13  ;;  %v1951_v30 = vpop.xlane.xlu1 %1950  ;;  %2121 = vadd.xlane.f32.xlu0 %v2120_v8 }
 0x868   :  { %3054 = vpow2.f32 %v2058_v28  ;;  %v2015_v54 = vsub.f32 %v4523_v32, %v1951_v30  ;;  %v1948_v5 = vpop.xlane.xlu0 %1947 }
 0x869   :  { %3056 = vpow2.f32 %v2056_v45  ;;  %v2014_v46 = vsub.f32 %v4525_v29, %v1948_v5 }
 0x86a   :  { %v4643_v52 = vpop.eup %3046  ;;  %v2062_v34 = vmul.f32 1.442695, %v2015_v54 }
 0x86b   :  { %v4645_v11 = vpop.eup %3048  ;;  %v2060_v38 = vmul.f32 1.442695, %v2014_v46  ;;  %v1957_v21 = vpop.xlane.xlu1 %1956  ;;  %v2111_v43 = vsel %vm5004_vm11, %v4643_v52, 0.0  ;;  %vm5019_vm11 = vmmov %vm4974_vm0 }
 0x86c   :  { %3058 = vpow2.f32 %v2062_v34  ;;  %v2017_v32 = vsub.f32 %v4531_v12, %v1957_v21  ;;  %v1954_v16 = vpop.xlane.xlu0 %1953  ;;  %2112 = vadd.xlane.f32.xlu1 %v2111_v43  ;;  %v2108_v57 = vsel %vm4974_vm0, %v4645_v11, 0.0 }
 0x86d   :  { %3060 = vpow2.f32 %v2060_v38  ;;  %v2016_v29 = vsub.f32 %v4533_v55, %v1954_v16  ;;  %2109 = vadd.xlane.f32.xlu0 %v2108_v57 }
 0x86e   :  { %v4653_v25 = vpop.eup %3050  ;;  %v2066_v47 = vmul.f32 1.442695, %v2017_v32 }
 0x86f   :  { %v4655_v22 = vpop.eup %3052  ;;  %v2064_v63 = vmul.f32 1.442695, %v2016_v29  ;;  %v1963_v50 = vpop.xlane.xlu1 %1962  ;;  %v2129_v26 = vsel %vm5005_vm14, %v4653_v25, 0.0  ;;  %vm5020_vm14 = vmmov %vm4974_vm0 }
 0x870   :  { %3062 = vpow2.f32 %v2066_v47  ;;  %v2019_v12 = vsub.f32 %v4539_v6, %v1963_v50  ;;  %v1960_v59 = vpop.xlane.xlu0 %1959  ;;  %2130 = vadd.xlane.f32.xlu1 %v2129_v26  ;;  %v2126_v7 = vsel %vm5006_vm2, %v4655_v22, 0.0  ;;  %vm5021_vm2 = vmmov %vm4974_vm0 }
 0x871   :  { %3064 = vpow2.f32 %v2064_v63  ;;  %v2018_v55 = vsub.f32 %v4541_v19, %v1960_v59  ;;  %2127 = vadd.xlane.f32.xlu0 %v2126_v7 }
 0x872   :  { %v4663_v61 = vpop.eup %3054  ;;  %v2070_v31 = vmul.f32 1.442695, %v2019_v12 }
 0x873   :  { %v4665_v27 = vpop.eup %3056  ;;  %v2068_v17 = vmul.f32 1.442695, %v2018_v55  ;;  %v1969_v35 = vpop.xlane.xlu1 %1968  ;;  %v2135_v49 = vsel %vm5007_vm7, %v4663_v61, 0.0  ;;  %vm5022_vm7 = vmmov %vm4974_vm0 }
 0x874   :  { %3066 = vpow2.f32 %v2070_v31  ;;  %v2021_v6 = vsub.f32 %v4547_v15, %v1969_v35  ;;  %v1966_v39 = vpop.xlane.xlu0 %1965  ;;  %2136 = vadd.xlane.f32.xlu1 %v2135_v49  ;;  %v2132_v53 = vsel %vm5008_vm3, %v4665_v27, 0.0  ;;  %vm5023_vm3 = vmmov %vm4974_vm0 }
 0x875   :  { %3068 = vpow2.f32 %v2068_v17  ;;  %v2020_v19 = vsub.f32 %v4549_v10, %v1966_v39  ;;  %2133 = vadd.xlane.f32.xlu0 %v2132_v53 }
 0x876   :  { %v4673_v60 = vpop.eup %3058  ;;  %v2074_v48 = vmul.f32 1.442695, %v2021_v6 }
 0x877   :  { %v4675_v37 = vpop.eup %3060  ;;  %v2072_v18 = vmul.f32 1.442695, %v2020_v19  ;;  %v1975_v51 = vpop.xlane.xlu1 %1974  ;;  %v2141_v13 = vsel %vm5009_vm4, %v4673_v60, 0.0  ;;  %vm5024_vm4 = vmmov %vm4974_vm0 }
 0x878   :  { %3070 = vpow2.f32 %v2074_v48  ;;  %v2023_v15 = vsub.f32 %v4555_v23, %v1975_v51  ;;  %v1972_v28 = vpop.xlane.xlu0 %1971  ;;  %2142 = vadd.xlane.f32.xlu1 %v2141_v13  ;;  %v2138_v45 = vsel %vm5010_vm13, %v4675_v37, 0.0  ;;  %vm5025_vm13 = vmmov %vm4974_vm0 }
 0x879   :  { %3072 = vpow2.f32 %v2072_v18  ;;  %v2022_v10 = vsub.f32 %v4557_v41, %v1972_v28  ;;  %2139 = vadd.xlane.f32.xlu0 %v2138_v45 }
 0x87a   :  { %v4683_v30 = vpop.eup %3062  ;;  %v2078_v58 = vmul.f32 1.442695, %v2023_v15 }
 0x87b   :  { %v4685_v54 = vpop.eup %3064  ;;  %v2076_v5 = vmul.f32 1.442695, %v2022_v10  ;;  %v1981_v8 = vpop.xlane.xlu1 %1980  ;;  %v2147_v46 = vsel %vm5011_vm9, %v4683_v30, 0.0  ;;  %vm5028_vm9 = vmmov %vm4974_vm0 }
 0x87c   :  { %3074 = vpow2.f32 %v2078_v58  ;;  %v2025_v23 = vsub.f32 %v4563_v4, %v1981_v8  ;;  %v1978_v34 = vpop.xlane.xlu0 %1977  ;;  %2148 = vadd.xlane.f32.xlu1 %v2147_v46  ;;  %v2144_v38 = vsel %vm5012_vm6, %v4685_v54, 0.0  ;;  %vm5030_vm6 = vmmov %vm4974_vm0 }
 0x87d   :  { %3076 = vpow2.f32 %v2076_v5  ;;  %v2024_v41 = vsub.f32 %v4565_v24, %v1978_v34  ;;  %2145 = vadd.xlane.f32.xlu0 %v2144_v38 }
 0x87e   :  { %v4693_v21 = vpop.eup %3066  ;;  %v2082_v43 = vmul.f32 1.442695, %v2025_v23 }
 0x87f   :  { %v4695_v32 = vpop.eup %3068  ;;  %v2080_v16 = vmul.f32 1.442695, %v2024_v41  ;;  %v1987_v57 = vpop.xlane.xlu1 %1986  ;;  %v2153_v29 = vsel %vm5013_vm10, %v4693_v21, 0.0  ;;  %vm5032_vm10 = vmmov %vm4974_vm0 }
 0x880   :  { %3078 = vpow2.f32 %v2082_v43  ;;  %v2027_v4 = vsub.f32 %v4571_v36, %v1987_v57  ;;  %v1984_v47 = vpop.xlane.xlu0 %1983  ;;  %2154 = vadd.xlane.f32.xlu1 %v2153_v29  ;;  %v2150_v63 = vsel %vm5014_vm12, %v4695_v32, 0.0  ;;  %vm5034_vm12 = vmmov %vm4974_vm0 }
 0x881   :  { %3080 = vpow2.f32 %v2080_v16  ;;  %v2026_v24 = vsub.f32 %v4573_v3, %v1984_v47  ;;  %2151 = vadd.xlane.f32.xlu0 %v2150_v63 }
 0x882   :  { %v4703_v50 = vpop.eup %3070  ;;  %v2086_v26 = vmul.f32 1.442695, %v2027_v4 }
 0x883   :  { %v4705_v12 = vpop.eup %3072  ;;  %v2084_v59 = vmul.f32 1.442695, %v2026_v24  ;;  %v1993_v7 = vpop.xlane.xlu1 %1992  ;;  %v2159_v55 = vsel %vm5015_vm5, %v4703_v50, 0.0  ;;  %vm5036_vm5 = vmmov %vm4974_vm0 }
 0x884   :  { %3082 = vpow2.f32 %v2086_v26  ;;  %v2029_v36 = vsub.f32 %v4579_v40, %v1993_v7  ;;  %v1990_v31 = vpop.xlane.xlu0 %1989  ;;  %2160 = vadd.xlane.f32.xlu1 %v2159_v55  ;;  %v2156_v17 = vsel %vm5016_vm15, %v4705_v12, 0.0  ;;  %vm5038_vm15 = vmmov %vm4974_vm0 }
 0x885   :  { %3084 = vpow2.f32 %v2084_v59  ;;  %v2028_v3 = vsub.f32 %v4581_v44, %v1990_v31  ;;  %2157 = vadd.xlane.f32.xlu0 %v2156_v17 }
 0x886   :  { %v4713_v35 = vpop.eup %3074  ;;  %v2090_v49 = vmul.f32 1.442695, %v2029_v36 }
 0x887   :  { %v4715_v6 = vpop.eup %3076  ;;  %v2088_v39 = vmul.f32 1.442695, %v2028_v3  ;;  %v1999_v53 = vpop.xlane.xlu1 %1998  ;;  %v2165_v19 = vsel %vm5017_vm1, %v4713_v35, 0.0  ;;  %vm5040_vm1 = vmmov %vm4974_vm0 }
 0x888   :  { %3086 = vpow2.f32 %v2090_v49  ;;  %v2031_v40 = vsub.f32 %v4587_v20, %v1999_v53  ;;  %2166 = vadd.xlane.f32.xlu1 %v2165_v19  ;;  %v1996_v48 = vpop.xlane.xlu0 %1995  ;;  %v2162_v18 = vsel %vm5018_vm8, %v4715_v6, 0.0  ;;  %vm5042_vm8 = vmmov %vm4974_vm0 }
 0x889   :  { %3088 = vpow2.f32 %v2088_v39  ;;  %v2030_v44 = vsub.f32 %v4589_v42, %v1996_v48  ;;  %2163 = vadd.xlane.f32.xlu0 %v2162_v18 }
 0x88a   :  { %v4723_v51 = vpop.eup %3078  ;;  %v2094_v13 = vmul.f32 1.442695, %v2031_v40 }
 0x88b   :  { %v4725_v15 = vpop.eup %3080  ;;  %v2092_v28 = vmul.f32 1.442695, %v2030_v44  ;;  %v2171_v45 = vsel %vm5019_vm11, %v4723_v51, 0.0  ;;  %vm5044_vm11 = vmmov %vm4974_vm0 }
 0x88c   :  { %3090 = vpow2.f32 %v2094_v13  ;;  %2172 = vadd.xlane.f32.xlu1 %v2171_v45  ;;  %v2168_v20 = vsel %vm4974_vm0, %v4725_v15, 0.0 }
 0x88d   :  { %3092 = vpow2.f32 %v2092_v28  ;;  %2169 = vadd.xlane.f32.xlu0 %v2168_v20 }
 0x88e   :  { %v4731_v10 = vpop.eup %3082 }
 0x88f   :  { %v4733_v42 = vpop.eup %3084  ;;  %v2177_v58 = vsel %vm5020_vm14, %v4731_v10, 0.0  ;;  %vm5047_vm14 = vmmov %vm4974_vm0 }
 0x890   :  { %2178 = vadd.xlane.f32.xlu1 %v2177_v58  ;;  %v2174_v5 = vsel %vm5021_vm2, %v4733_v42, 0.0  ;;  %vm5049_vm2 = vmmov %vm4974_vm0 }
 0x891   :  { %2175 = vadd.xlane.f32.xlu0 %v2174_v5 }
 0x892   :  { %v4739_v8 = vpop.eup %3086 }
 0x893   :  { %v4741_v46 = vpop.eup %3088  ;;  %v2183_v23 = vsel %vm5022_vm7, %v4739_v8, 0.0  ;;  %vm5051_vm7 = vmmov %vm4974_vm0 }
 0x894   :  { %2184 = vadd.xlane.f32.xlu1 %v2183_v23  ;;  %v2180_v34 = vsel %vm5023_vm3, %v4741_v46, 0.0  ;;  %vm5053_vm3 = vmmov %vm4974_vm0 }
 0x895   :  { %2181 = vadd.xlane.f32.xlu0 %v2180_v34 }
 0x896   :  { %v4747_v38 = vpop.eup %3090 }
 0x897   :  { %v4749_v41 = vpop.eup %3092  ;;  %v2189_v43 = vsel %vm5024_vm4, %v4747_v38, 0.0  ;;  %vm5055_vm4 = vmmov %vm4974_vm0 }
 0x898   :  { %2190 = vadd.xlane.f32.xlu1 %v2189_v43  ;;  %v2186_v16 = vsel %vm5025_vm13, %v4749_v41, 0.0  ;;  %vm5056_vm13 = vmmov %vm4974_vm0 }
 0x899   :  { %2187 = vadd.xlane.f32.xlu0 %v2186_v16 }
 0x8e6   :  { %v2101_v57 = vpop.xlane.xlu1 %2100 }
 0x8e7   :  { %v2098_v29 = vpop.xlane.xlu0 %2097  ;;  %3094 = vrcp.f32 %v2101_v57 }
 0x8e8   :  { %3096 = vrcp.f32 %v2098_v29 }
 0x8ea   :  { %v2119_v4 = vpop.xlane.xlu1 %2118 }
 0x8eb   :  { %v2116_v47 = vpop.xlane.xlu0 %2115 }
 0x8ee   :  { %v2107_v63 = vpop.xlane.xlu1 %2106 }
 0x8ef   :  { %v2104_v24 = vpop.xlane.xlu0 %2103 }
 0x8f1   :  { %v3095_v44 = vpop.eup %3094 }
 0x8f2   :  { %v3097_v28 = vpop.eup %3096  ;;  %v2225_v58 = vmul.f32 %v3095_v44, %v4603_v0 }
 0x8f3   :  { %v2125_v26 = vpop.xlane.xlu1 %2124  ;;  %v2224_v43 = vmul.f32 %v3097_v28, %v4605_v2 }
 0x8f4   :  { %v2122_v59 = vpop.xlane.xlu0 %2121 }
 0x8f9   :  { %v2113_v7 = vpop.xlane.xlu1 %2112 }
 0x8fa   :  { %v2110_v55 = vpop.xlane.xlu0 %2109 }
 0x8fd   :  { %v2131_v36 = vpop.xlane.xlu1 %2130 }
 0x8fe   :  { %v4755_v31 = vpop.xlane.xlu0 %2127 }
 0x901   :  { %v4757_v17 = vpop.xlane.xlu1 %2136 }
 0x902   :  { %v4759_v3 = vpop.xlane.xlu0 %2133 }
 0x905   :  { %v4761_v49 = vpop.xlane.xlu1 %2142 }
 0x906   :  { %v4763_v39 = vpop.xlane.xlu0 %2139 }
 0x909   :  { %v2149_v53 = vpop.xlane.xlu1 %2148 }
 0x90a   :  { %3098 = vrcp.f32 %v2149_v53  ;;  %v2146_v19 = vpop.xlane.xlu0 %2145 }
 0x90b   :  { %3100 = vrcp.f32 %v2146_v19  ;;  %v5027_v19 = vld [vmem:[#allocation6_spill] sm:$0xff] }
 0x90c   :  { %3102 = vrcp.f32 %v2107_v63 }
 0x90d   :  { %3104 = vrcp.f32 %v2104_v24  ;;  %v2155_v40 = vpop.xlane.xlu1 %2154 }
 0x90e   :  { %3106 = vrcp.f32 %v2155_v40  ;;  %v2152_v48 = vpop.xlane.xlu0 %2151 }
 0x90f   :  { %3108 = vrcp.f32 %v2152_v48 }
 0x910   :  { %3110 = vrcp.f32 %v2113_v7 }
 0x911   :  { %3112 = vrcp.f32 %v2110_v55  ;;  %v2161_v18 = vpop.xlane.xlu1 %2160 }
 0x912   :  { %3114 = vrcp.f32 %v2161_v18  ;;  %v2158_v13 = vpop.xlane.xlu0 %2157 }
 0x913   :  { %3116 = vrcp.f32 %v2158_v13 }
 0x914   :  { %v3099_v45 = vpop.eup %3098  ;;  %3118 = vrcp.f32 %v2119_v4 }
 0x915   :  { %v3101_v20 = vpop.eup %3100  ;;  %3120 = vrcp.f32 %v2116_v47  ;;  %v2241_v5 = vmul.f32 %v3099_v45, %v4683_v30  ;;  %v2167_v23 = vpop.xlane.xlu1 %2166  ;;  %v5026_v47 = vld [vmem:[#allocation5_spill] sm:$0xff] }
 0x916   :  { %v3103_v34 = vpop.eup %3102  ;;  %v2240_v16 = vmul.f32 %v3101_v20, %v4685_v54  ;;  %3122 = vrcp.f32 %v2167_v23  ;;  %v2164_v57 = vpop.xlane.xlu0 %2163 }
 0x917   :  { %v3105_v29 = vpop.eup %3104  ;;  %v2257_v63 = vsub.f32 %v2225_v58, %v2241_v5  ;;  %3124 = vrcp.f32 %v2164_v57  ;;  %v2227_v0 = vmul.f32 %v3103_v34, %v4623_v14 }
 0x918   :  { %v3107_v24 = vpop.eup %3106  ;;  %3126 = vrcp.f32 %v2125_v26  ;;  %v2256_v4 = vsub.f32 %v2224_v43, %v2240_v16  ;;  %v2226_v54 = vmul.f32 %v3105_v29, %v4625_v56  ;;  %v5029_v56 = vld [vmem:[#allocation7_spill] sm:$0xff] }
 0x919   :  { %v3109_v7 = vpop.eup %3108  ;;  %3128 = vrcp.f32 %v2122_v59  ;;  %v2273_v30 = vadd.f32 %v2257_v63, %v5026_v47  ;;  %v2243_v55 = vmul.f32 %v3107_v24, %v4693_v21  ;;  %v2173_v53 = vpop.xlane.xlu1 %2172 }
 0x91a   :  { %v3111_v2 = vpop.eup %3110  ;;  %v2272_v40 = vadd.f32 %v2256_v4, %v5027_v19  ;;  %v2242_v48 = vmul.f32 %v3109_v7, %v4695_v32  ;;  %3130 = vrcp.f32 %v2173_v53  ;;  %v2170_v18 = vpop.xlane.xlu0 %2169 }
 0x91b   :  { %v3113_v26 = vpop.eup %3112  ;;  %v2289_v44 = vmul.f32 0.5, %v2273_v30  ;;  %v2259_v13 = vsub.f32 %v2227_v0, %v2243_v55  ;;  %3132 = vrcp.f32 %v2170_v18  ;;  %v2229_v21 = vmul.f32 %v3111_v2, %v4643_v52  ;;  %v5031_v52 = vld [vmem:[#allocation8_spill] sm:$0xff] }
 0x91c   :  { %v3115_v14 = vpop.eup %3114  ;;  %3134 = vrcp.f32 %v2131_v36  ;;  %v2288_v59 = vmul.f32 0.5, %v2272_v40  ;;  %v2258_v28 = vsub.f32 %v2226_v54, %v2242_v48  ;;  %v2228_v36 = vmul.f32 %v3113_v26, %v4645_v11 }
 0x91d   :  { %v3117_v45 = vpop.eup %3116  ;;  %3136 = vrcp.f32 %v4755_v31  ;;  %2305 = vst.msk [vmem:[%s4891_s9 + $0x8] sm:$0xff] %vm5028_vm9, %v2289_v44  ;;  %v2275_v32 = vadd.f32 %v2259_v13, %v5029_v56  ;;  %v2245_v20 = vmul.f32 %v3115_v14, %v4703_v50  ;;  %v2179_v58 = vpop.xlane.xlu1 %2178 }
 0x91e   :  { %v3119_v5 = vpop.eup %3118  ;;  %2304 = vst.msk [vmem:[%s4891_s9] sm:$0xff] %vm5030_vm6, %v2288_v59  ;;  %v2274_v31 = vadd.f32 %v2258_v28, %v5031_v52  ;;  %v2244_v23 = vmul.f32 %v3117_v45, %v4705_v12  ;;  %3138 = vrcp.f32 %v2179_v58  ;;  %v2176_v34 = vpop.xlane.xlu0 %2175  ;;  %v5033_v12 = vld [vmem:[#allocation9_spill] sm:$0xff] }
 0x91f   :  { %v3121_v43 = vpop.eup %3120  ;;  %v2291_v16 = vmul.f32 0.5, %v2275_v32  ;;  %v2261_v57 = vsub.f32 %v2229_v21, %v2245_v20  ;;  %3140 = vrcp.f32 %v2176_v34  ;;  %v2231_v24 = vmul.f32 %v3119_v5, %v4613_v33  ;;  %v5035_v33 = vld [vmem:[#allocation10_spill] sm:$0xff]  ;;  %v5041_v58 = vld [vmem:[#allocation13_spill] sm:$0xff] }
 0x920   :  { %v3123_v50 = vpop.eup %3122  ;;  %3142 = vrcp.f32 %v4757_v17  ;;  %v2290_v29 = vmul.f32 0.5, %v2274_v31  ;;  %v2260_v11 = vsub.f32 %v2228_v36, %v2244_v23  ;;  %v2230_v17 = vmul.f32 %v3121_v43, %v4615_v1  ;;  %v5043_v31 = vld [vmem:[#allocation14_spill] sm:$0xff] }
 0x921   :  { %v3125_v63 = vpop.eup %3124  ;;  %3144 = vrcp.f32 %v4759_v3  ;;  %2307 = vst.msk [vmem:[%s4891_s9 + $0x18] sm:$0xff] %vm5032_vm10, %v2291_v16  ;;  %v2277_v4 = vadd.f32 %v2261_v57, %v5033_v12  ;;  %v2247_v7 = vmul.f32 %v3123_v50, %v4713_v35  ;;  %v2185_v0 = vpop.xlane.xlu1 %2184 }
 0x922   :  { %v3127_v47 = vpop.eup %3126  ;;  %2306 = vst.msk [vmem:[%s4891_s9 + $0x10] sm:$0xff] %vm5034_vm12, %v2290_v29  ;;  %v2276_v3 = vadd.f32 %v2260_v11, %v5035_v33  ;;  %v2246_v30 = vmul.f32 %v3125_v63, %v4715_v6  ;;  %3146 = vrcp.f32 %v2185_v0  ;;  %v2182_v55 = vpop.xlane.xlu0 %2181  ;;  %v5037_v6 = vld [vmem:[#allocation11_spill] sm:$0xff] }
 0x923   :  { %v3129_v53 = vpop.eup %3128  ;;  %v2293_v2 = vmul.f32 0.5, %v2277_v4  ;;  %v2263_v54 = vsub.f32 %v2231_v24, %v2247_v7  ;;  %3148 = vrcp.f32 %v2182_v55  ;;  %v2233_v48 = vmul.f32 %v3127_v47, %v4633_v62  ;;  %v5039_v62 = vld [vmem:[#allocation12_spill] sm:$0xff] }
 0x924   :  { %v3131_v35 = vpop.eup %3130  ;;  %3150 = vrcp.f32 %v4761_v49  ;;  %v2292_v19 = vmul.f32 0.5, %v2276_v3  ;;  %v2262_v1 = vsub.f32 %v2230_v17, %v2246_v30  ;;  %v2232_v49 = vmul.f32 %v3129_v53, %v4635_v9  ;;  %v5046_v4 = vld [vmem:[#allocation16_spill] sm:$0xff] }
 0x925   :  { %v3133_v40 = vpop.eup %3132  ;;  %3152 = vrcp.f32 %v4763_v39  ;;  %2309 = vst.msk [vmem:[%s4891_s9 + $0x28] sm:$0xff] %vm5036_vm5, %v2293_v2  ;;  %v2279_v18 = vadd.f32 %v2263_v54, %v5037_v6  ;;  %v2249_v26 = vmul.f32 %v3131_v35, %v4723_v51  ;;  %v2191_v44 = vpop.xlane.xlu1 %2190  ;;  %v5050_v54 = vld [vmem:[#allocation18_spill] sm:$0xff]  ;;  %v5054_v6 = vld [vmem:[#allocation20_spill] sm:$0xff] }
 0x926   :  { %v3135_v13 = vpop.eup %3134  ;;  %2308 = vst.msk [vmem:[%s4891_s9 + $0x20] sm:$0xff] %vm5038_vm15, %v2292_v19  ;;  %v2278_v39 = vadd.f32 %v2262_v1, %v5039_v62  ;;  %v2248_v14 = vmul.f32 %v3133_v40, %v4725_v15  ;;  %3154 = vrcp.f32 %v2191_v44  ;;  %v2188_v59 = vpop.xlane.xlu0 %2187 }
 0x927   :  { %v3137_v28 = vpop.eup %3136  ;;  %v2295_v45 = vmul.f32 0.5, %v2279_v18  ;;  %v2265_v21 = vsub.f32 %v2233_v48, %v2249_v26  ;;  %3156 = vrcp.f32 %v2188_v59  ;;  %v2235_v9 = vmul.f32 %v3135_v13, %v4653_v25 }
 0x928   :  { %v3139_v51 = vpop.eup %3138  ;;  %v2294_v56 = vmul.f32 0.5, %v2278_v39  ;;  %v2264_v32 = vsub.f32 %v2232_v49, %v2248_v14  ;;  %v2234_v52 = vmul.f32 %v3137_v28, %v4655_v22  ;;  %v5045_v22 = vld [vmem:[#allocation15_spill] sm:$0xff] }
 0x929   :  { %v3141_v20 = vpop.eup %3140  ;;  %2311 = vst.msk [vmem:[%s4891_s9 + $0x38] sm:$0xff] %vm5040_vm1, %v2295_v45  ;;  %v2281_v5 = vadd.f32 %v2265_v21, %v5041_v58  ;;  %v2251_v15 = vmul.f32 %v3139_v51, %v4731_v10 }
 0x92a   :  { %v3143_v36 = vpop.eup %3142  ;;  %2310 = vst.msk [vmem:[%s4891_s9 + $0x30] sm:$0xff] %vm5042_vm8, %v2294_v56  ;;  %v2280_v23 = vadd.f32 %v2264_v32, %v5043_v31  ;;  %v2250_v25 = vmul.f32 %v3141_v20, %v4733_v42 }
 0x92b   :  { %v3145_v34 = vpop.eup %3144  ;;  %v2297_v43 = vmul.f32 0.5, %v2281_v5  ;;  %v2267_v16 = vsub.f32 %v2235_v9, %v2251_v15  ;;  %v2237_v10 = vmul.f32 %v3143_v36, %v4663_v61 }
 0x92c   :  { %v3147_v57 = vpop.eup %3146  ;;  %v2296_v50 = vmul.f32 0.5, %v2280_v23  ;;  %v2266_v29 = vsub.f32 %v2234_v52, %v2250_v25  ;;  %v2236_v42 = vmul.f32 %v3145_v34, %v4665_v27  ;;  %v5048_v27 = vld [vmem:[#allocation17_spill] sm:$0xff] }
 0x92d   :  { %v3149_v11 = vpop.eup %3148  ;;  %2313 = vst.msk [vmem:[%s4891_s9 + $0x48] sm:$0xff] %vm5044_vm11, %v2297_v43  ;;  %v2283_v63 = vadd.f32 %v2267_v16, %v5045_v22  ;;  %v2253_v24 = vmul.f32 %v3147_v57, %v4739_v8 }
 0x92e   :  { %v3151_v12 = vpop.eup %3150  ;;  %2312 = vst.msk [vmem:[%s4891_s9 + $0x40] sm:$0xff] %vm4974_vm0, %v2296_v50  ;;  %v2282_v7 = vadd.f32 %v2266_v29, %v5046_v4  ;;  %v2252_v61 = vmul.f32 %v3149_v11, %v4741_v46 }
 0x92f   :  { %v3153_v0 = vpop.eup %3152  ;;  %v2299_v47 = vmul.f32 0.5, %v2283_v63  ;;  %v2269_v17 = vsub.f32 %v2237_v10, %v2253_v24  ;;  %v2239_v8 = vmul.f32 %v3151_v12, %v4673_v60 }
 0x930   :  { %v3155_v33 = vpop.eup %3154  ;;  %v2298_v3 = vmul.f32 0.5, %v2282_v7  ;;  %v2268_v30 = vsub.f32 %v2236_v42, %v2252_v61  ;;  %v2238_v46 = vmul.f32 %v3153_v0, %v4675_v37 }
 0x931   :  { %v3157_v55 = vpop.eup %3156  ;;  %2315 = vst.msk [vmem:[%s4891_s9 + $0x58] sm:$0xff] %vm5047_vm14, %v2299_v47  ;;  %v2285_v53 = vadd.f32 %v2269_v17, %v5048_v27  ;;  %v2255_v2 = vmul.f32 %v3155_v33, %v4747_v38  ;;  %v5052_v38 = vld [vmem:[#allocation19_spill] sm:$0xff] }
 0x932   :  { %2314 = vst.msk [vmem:[%s4891_s9 + $0x50] sm:$0xff] %vm5049_vm2, %v2298_v3  ;;  %v2284_v35 = vadd.f32 %v2268_v30, %v5050_v54  ;;  %v2254_v60 = vmul.f32 %v3157_v55, %v4749_v41 }
 0x933   :  { %v2301_v19 = vmul.f32 0.5, %v2285_v53  ;;  %v2271_v1 = vsub.f32 %v2239_v8, %v2255_v2 }
 0x934   :  { %v2300_v40 = vmul.f32 0.5, %v2284_v35  ;;  %v2270_v48 = vsub.f32 %v2238_v46, %v2254_v60 }
 0x935   :  { %2317 = vst.msk [vmem:[%s4891_s9 + $0x68] sm:$0xff] %vm5051_vm7, %v2301_v19  ;;  %v2287_v37 = vadd.f32 %v2271_v1, %v5052_v38 }
 0x936   :  { %2316 = vst.msk [vmem:[%s4891_s9 + $0x60] sm:$0xff] %vm5053_vm3, %v2300_v40  ;;  %v2286_v18 = vadd.f32 %v2270_v48, %v5054_v6 }
 0x937   :  { %v2303_v26 = vmul.f32 0.5, %v2287_v37 }
 0x938   :  { %v2302_v41 = vmul.f32 0.5, %v2286_v18 }
 0x939   :  { %2319 = vst.msk [vmem:[%s4891_s9 + $0x78] sm:$0xff] %vm5055_vm4, %v2303_v26 }
 0x93a   :  { %2318 = vst.msk [vmem:[%s4891_s9 + $0x70] sm:$0xff] %vm5056_vm13, %v2302_v41 }
 0x93b   :  { %2324 = vsyncpa [#allocation3], 1 }

</bundles_post_ra>
